<compile_context>
chip_gen: v6e
topology: v6e:2x2x1
jax: 0.10.0
libtpu: 0.0.40
codegen_flags: <defaults>
</compile_context>

<pallas_src>
import jax
import jax.numpy as jnp
from jax.experimental import pallas as pl
from jax.experimental.pallas import tpu as pltpu

BN_EPS = 1e-5
LANE = 128


def _round_up(x, m):
    return ((x + m - 1) // m) * m


# ----------------------------------------------------------------------------
# Parameter init (synthetic, deterministic — mirrors the PyTorch module shapes)
# ----------------------------------------------------------------------------
def _init_mlp(key, dims, with_bn):
    layers = []
    n = len(dims) - 1
    for i in range(n):
        d_in, d_out = dims[i], dims[i + 1]
        key, kw, kb, kg, kbe, km, kv = jax.random.split(key, 7)
        bound = 1.0 / float(d_in) ** 0.5
        layer = {
            # nn.Linear weight is (out, in); stored transposed as (in, out).
            "w": jax.random.uniform(kw, (d_in, d_out), jnp.float32, -bound, bound),
            "b": jax.random.uniform(kb, (1, d_out), jnp.float32, -bound, bound),
        }
        if with_bn and i < n - 1:
            layer["gamma"] = 1.0 + 0.1 * jax.random.normal(kg, (1, d_out), jnp.float32)
            layer["beta"] = 0.1 * jax.random.normal(kbe, (1, d_out), jnp.float32)
            layer["running_mean"] = 0.05 * jax.random.normal(km, (1, d_out), jnp.float32)
            layer["running_var"] = 1.0 + 0.1 * jax.random.uniform(kv, (1, d_out), jnp.float32)
        layers.append(layer)
    return layers


def init_model_params(key, recognition_model_dims, generative_model_dims, n_clusters):
    views = []
    for v in range(len(recognition_model_dims)):
        key, k_enc, k_dec = jax.random.split(key, 3)
        views.append({
            "encoder": _init_mlp(k_enc, recognition_model_dims[v], with_bn=True),
            "decoder": _init_mlp(k_dec, generative_model_dims[v], with_bn=False),
        })
    key, kc = jax.random.split(key)
    concat_dim = sum(d[-1] for d in recognition_model_dims)
    cluster_centers = jax.random.normal(kc, (n_clusters, concat_dim), jnp.float32)
    return {"views": views, "cluster_centers": cluster_centers}


# ----------------------------------------------------------------------------
# Host-side folding / packing: BN fold, 128-lane padding of EVERY layer,
# bias packing, bf16 weight cast.
# ----------------------------------------------------------------------------
def fold_and_pack_view(view_params):
    enc_layers = view_params["encoder"]
    dec_layers = view_params["decoder"]
    n_enc = len(enc_layers)

    folded = []
    for i, L in enumerate(enc_layers):
        w, b = L["w"], L["b"][0]
        if i < n_enc - 1:  # fold eval-mode BatchNorm into the Linear
            s = L["gamma"][0] * jax.lax.rsqrt(L["running_var"][0] + BN_EPS)
            w = w * s[None, :]
            b = (b - L["running_mean"][0]) * s + L["beta"][0]
        folded.append((w, b))
    for L in dec_layers:
        folded.append((L["w"], L["b"][0]))

    d_enc = int(folded[n_enc - 1][0].shape[1])
    d_rec = int(folded[-1][0].shape[1])

    # Pad every layer's out-dim (and the next layer's in-dim) to a 128-lane
    # multiple.  Zero weight columns + zero bias => ReLU keeps pad columns
    # exactly 0, so padded layers compose exactly; decoder-last pad columns
    # (sigmoid(0) = 0.5) are sliced off / never read.
    padded, d_outs_pad = [], []
    prev_pad = None
    for idx, (w, b) in enumerate(folded):
        d_in, d_out = w.shape
        out_pad = _round_up(d_out, LANE)
        pad_rows = 0 if idx == 0 else prev_pad - d_in
        w = jnp.pad(w, ((0, pad_rows), (0, out_pad - d_out)))
        b = jnp.pad(b, (0, out_pad - d_out))
        padded.append((w, b))
        d_outs_pad.append(out_pad)
        prev_pad = out_pad

    width = max(d_outs_pad)
    bias_mat = jnp.zeros((len(padded), width), jnp.float32)
    for i, (_, b) in enumerate(padded):
        bias_mat = bias_mat.at[i, : b.shape[0]].set(b)
    ws = tuple(w.astype(jnp.bfloat16) for w, _ in padded)

    return {
        "ws": ws, "bias_mat": bias_mat, "d_outs_pad": tuple(d_outs_pad),
        "n_layers": len(padded), "n_enc": n_enc,
        "d_enc": d_enc, "d_rec": d_rec,
        "d_enc_pad": d_outs_pad[n_enc - 1], "d_rec_pad": d_outs_pad[-1],
    }


# ----------------------------------------------------------------------------
# Fused all-views kernel
# ----------------------------------------------------------------------------
def _make_fused_kernel(metas):
    n_views = len(metas)
    layer_counts = tuple(m["n_layers"] for m in metas)
    enc_idx = tuple(m["n_enc"] - 1 for m in metas)
    d_outs_all = tuple(m["d_outs_pad"] for m in metas)

    def kernel(*refs):
        pos = 0
        x_refs = refs[pos:pos + n_views]; pos += n_views
        w_refs, b_refs = [], []
        for L in layer_counts:
            w_refs.append(refs[pos:pos + L]); pos += L
            b_refs.append(refs[pos]); pos += 1
        out_refs = refs[pos:pos + 2 * n_views]

        for v in range(n_views):
            n_layers = layer_counts[v]
            d_outs = d_outs_all[v]
            biases = b_refs[v][...]          # (n_layers, width) f32, one operand
            h = x_refs[v][...]               # bf16 activations for the MXU
            for i in range(n_layers):
                z = jnp.dot(h, w_refs[v][i][...],
                            preferred_element_type=jnp.float32)
                # static, lane-aligned (128-multiple) slice of one bias row
                z = z + biases[i:i + 1, :d_outs[i]]
                if i == n_layers - 1:
                    a = jax.nn.sigmoid(z)            # decoder output: Sigmoid (EUP)
                else:
                    a = jnp.maximum(z, 0.0)          # ReLU (f32, VPU)
                if i == enc_idx[v]:
                    out_refs[2 * v][...] = a.astype(out_refs[2 * v].dtype)
                if i == n_layers - 1:
                    out_refs[2 * v + 1][...] = a.astype(out_refs[2 * v + 1].dtype)
                else:
                    h = a.astype(jnp.bfloat16)       # bf16 only for the next dot

    return kernel


def _pick_batch_tile(n, sublane, batch_tile=None):
    if batch_tile is not None:
        return _round_up(batch_tile, sublane)
    if n >= 1024:
        # Multiple of 256 (full MXU M on v6e/v7x); VMEM-safe on v7x (32 MiB scoped).
        return 512
    # Small n: aim for >= 2 grid steps so v7x's second TensorCore is not idle.
    half = _round_up(max(1, (n + 1) // 2), sublane)
    return max(sublane, min(512, half))


def multiview_forward(views, packed_views, out_dtype=jnp.bfloat16, batch_tile=None):
    """Eval-mode forward.  Returns (encoded_views, reconstructed_views)."""
    n = views[0].shape[0]
    sublane = 16 if out_dtype == jnp.bfloat16 else 8
    tb = _pick_batch_tile(n, sublane, batch_tile)
    n_pad = _round_up(n, tb)
    grid = (n_pad // tb,)

    inputs, in_specs = [], []
    # 1) view inputs (batch-tiled, bf16, zero row-padded to the cdiv grid)
    for x in views:
        xb = x.astype(jnp.bfloat16)
        if n_pad > n:
            xb = jnp.pad(xb, ((0, n_pad - n), (0, 0)))
        inputs.append(xb)
        in_specs.append(pl.BlockSpec((tb, xb.shape[1]), lambda i: (i, 0)))
    # 2) per-view weights + packed bias matrix (VMEM-resident across all steps)
    for p in packed_views:
        for w in p["ws"]:
            inputs.append(w)
            in_specs.append(pl.BlockSpec(w.shape, lambda i: (0, 0)))
        inputs.append(p["bias_mat"])
        in_specs.append(pl.BlockSpec(p["bias_mat"].shape, lambda i: (0, 0)))

    out_shapes, out_specs = [], []
    for p in packed_views:
        out_shapes.append(jax.ShapeDtypeStruct((n_pad, p["d_enc_pad"]), out_dtype))
        out_specs.append(pl.BlockSpec((tb, p["d_enc_pad"]), lambda i: (i, 0)))
        out_shapes.append(jax.ShapeDtypeStruct((n_pad, p["d_rec_pad"]), out_dtype))
        out_specs.append(pl.BlockSpec((tb, p["d_rec_pad"]), lambda i: (i, 0)))

    outs = pl.pallas_call(
        _make_fused_kernel(packed_views),
        out_shape=tuple(out_shapes),
        grid=grid,
        in_specs=in_specs,
        out_specs=tuple(out_specs),
        compiler_params=pltpu.CompilerParams(
            dimension_semantics=("parallel",)),
    )(*inputs)

    # Slice back to the module's exact output shapes.  Consumers that can use
    # the 128-lane-padded bf16 outputs directly (enc pad columns are exactly 0)
    # should skip these host-side copies.
    encoded, reconstructed = [], []
    for v, p in enumerate(packed_views):
        encoded.append(outs[2 * v][:n, : p["d_enc"]])
        reconstructed.append(outs[2 * v + 1][:n, : p["d_rec"]])
    return encoded, reconstructed


# ----------------------------------------------------------------------------
# Pure-JAX references
# ----------------------------------------------------------------------------
def _reference_matched(x, packed, out_dtype=jnp.bfloat16):
    """Same math as the kernel (folded BN, padded bf16 operands, f32 accum)."""
    ws, bias_mat, d_outs = packed["ws"], packed["bias_mat"], packed["d_outs_pad"]
    n_enc, n_layers = packed["n_enc"], packed["n_layers"]
    h = x.astype(jnp.bfloat16)
    enc = rec = None
    for i in range(n_layers):
        z = jnp.dot(h, ws[i], preferred_element_type=jnp.float32)
        z = z + bias_mat[i:i + 1, :d_outs[i]]
        a = jax.nn.sigmoid(z) if i == n_layers - 1 else jnp.maximum(z, 0.0)
        if i == n_enc - 1:
            enc = a
        if i == n_layers - 1:
            rec = a
        h = a.astype(jnp.bfloat16)
    return (enc.astype(out_dtype)[:, : packed["d_enc"]],
            rec.astype(out_dtype)[:, : packed["d_rec"]])


def _reference_f32(x, view_params):
    """Exact eval-mode PyTorch semantics in float32 (BN unfolded)."""
    enc_layers, dec_layers = view_params["encoder"], view_params["decoder"]
    n_enc = len(enc_layers)
    h = x.astype(jnp.float32)
    for i, L in enumerate(enc_layers):
        h = h @ L["w"] + L["b"][0]
        if i < n_enc - 1:
            inv = jax.lax.rsqrt(L["running_var"][0] + BN_EPS)
            h = (h - L["running_mean"][0]) * inv * L["gamma"][0] + L["beta"][0]
        h = jnp.maximum(h, 0.0)          # hidden ReLU; final activation='relu'
        # Dropout in eval mode is identity.
    enc = h
    for j, L in enumerate(dec_layers):
        h = h @ L["w"] + L["b"][0]
        h = jnp.maximum(h, 0.0) if j < len(dec_layers) - 1 else jax.nn.sigmoid(h)
    return enc, h


# ----------------------------------------------------------------------------
if __name__ == "__main__":
    n_views = 2
    recognition_model_dims = [[32, 64, 48, 16], [40, 64, 16]]
    generative_model_dims = [[16, 48, 32], [16, 40]]
    n_clusters = 5
    # temperature / drop_rate do not affect the eval-mode forward pass.

    key = jax.random.PRNGKey(0)
    key, kx0, kx1, kp = jax.random.split(key, 4)

    batch = 24   # non-multiple of the batch tile: exercises cdiv grid + padded last tile
    views = [
        jax.random.normal(kx0, (batch, recognition_model_dims[0][0]), jnp.float32),
        jax.random.normal(kx1, (batch, recognition_model_dims[1][0]), jnp.float32),
    ]

    params = init_model_params(kp, recognition_model_dims, generative_model_dims, n_clusters)
    packed_views = [fold_and_pack_view(vp) for vp in params["views"]]

    encoded, reconstructed = multiview_forward(views, packed_views)
    encoded = [jax.block_until_ready(e) for e in encoded]
    reconstructed = [jax.block_until_ready(r) for r in reconstructed]

    ok = True
    for v in range(n_views):
        d_enc = recognition_model_dims[v][-1]
        d_rec = generative_model_dims[v][-1]
        assert encoded[v].shape == (batch, d_enc), encoded[v].shape
        assert reconstructed[v].shape == (batch, d_rec), reconstructed[v].shape

        enc_m, rec_m = _reference_matched(views[v], packed_views[v])
        ok &= bool(jnp.allclose(encoded[v].astype(jnp.float32),
                                enc_m.astype(jnp.float32), atol=2e-2, rtol=2e-2))
        ok &= bool(jnp.allclose(reconstructed[v].astype(jnp.float32),
                                rec_m.astype(jnp.float32), atol=2e-2, rtol=2e-2))

        enc_f, rec_f = _reference_f32(views[v], params["views"][v])
        ok &= bool(jnp.allclose(encoded[v].astype(jnp.float32), enc_f, atol=0.15))
        ok &= bool(jnp.allclose(reconstructed[v].astype(jnp.float32), rec_f, atol=0.15))

    assert ok, "mismatch vs reference"
    print("KERNEL_OK")
</pallas_src>

<mosaic_0001>
module attributes {stable_mosaic.version = 11 : i64} {
  func.func @kernel(%arg0: i32, %arg1: memref<16x32xbf16, #tpu.memory_space<vmem>>, %arg2: memref<16x40xbf16, #tpu.memory_space<vmem>>, %arg3: memref<32x128xbf16, #tpu.memory_space<vmem>>, %arg4: memref<128x128xbf16, #tpu.memory_space<vmem>>, %arg5: memref<128x128xbf16, #tpu.memory_space<vmem>>, %arg6: memref<128x128xbf16, #tpu.memory_space<vmem>>, %arg7: memref<128x128xbf16, #tpu.memory_space<vmem>>, %arg8: memref<5x128xf32, #tpu.memory_space<vmem>>, %arg9: memref<40x128xbf16, #tpu.memory_space<vmem>>, %arg10: memref<128x128xbf16, #tpu.memory_space<vmem>>, %arg11: memref<128x128xbf16, #tpu.memory_space<vmem>>, %arg12: memref<3x128xf32, #tpu.memory_space<vmem>>, %arg13: memref<16x128xbf16, #tpu.memory_space<vmem>>, %arg14: memref<16x128xbf16, #tpu.memory_space<vmem>>, %arg15: memref<16x128xbf16, #tpu.memory_space<vmem>>, %arg16: memref<16x128xbf16, #tpu.memory_space<vmem>>) attributes {dimension_semantics = [#tpu.dimension_semantics<parallel>], iteration_bounds = array<i64: 2>, scalar_prefetch = 0 : i64, scratch_operands = 0 : i64, tpu.core_type = #tpu.core_type<tc>, window_params = [{transform_indices = @transform_0, window_bounds = array<i64: 16, 32>}, {transform_indices = @transform_1, window_bounds = array<i64: 16, 40>}, {pipeline_mode = #tpu.pipeline_mode<synchronous>, transform_indices = @transform_2, window_bounds = array<i64: 32, 128>}, {pipeline_mode = #tpu.pipeline_mode<synchronous>, transform_indices = @transform_3, window_bounds = array<i64: 128, 128>}, {pipeline_mode = #tpu.pipeline_mode<synchronous>, transform_indices = @transform_4, window_bounds = array<i64: 128, 128>}, {pipeline_mode = #tpu.pipeline_mode<synchronous>, transform_indices = @transform_5, window_bounds = array<i64: 128, 128>}, {pipeline_mode = #tpu.pipeline_mode<synchronous>, transform_indices = @transform_6, window_bounds = array<i64: 128, 128>}, {pipeline_mode = #tpu.pipeline_mode<synchronous>, transform_indices = @transform_7, window_bounds = array<i64: 5, 128>}, {pipeline_mode = #tpu.pipeline_mode<synchronous>, transform_indices = @transform_8, window_bounds = array<i64: 40, 128>}, {pipeline_mode = #tpu.pipeline_mode<synchronous>, transform_indices = @transform_9, window_bounds = array<i64: 128, 128>}, {pipeline_mode = #tpu.pipeline_mode<synchronous>, transform_indices = @transform_10, window_bounds = array<i64: 128, 128>}, {pipeline_mode = #tpu.pipeline_mode<synchronous>, transform_indices = @transform_11, window_bounds = array<i64: 3, 128>}, {transform_indices = @transform_12, window_bounds = array<i64: 16, 128>}, {transform_indices = @transform_13, window_bounds = array<i64: 16, 128>}, {transform_indices = @transform_14, window_bounds = array<i64: 16, 128>}, {transform_indices = @transform_15, window_bounds = array<i64: 16, 128>}]} {
    %c0 = arith.constant 0 : index
    %c0_0 = arith.constant 0 : index
    %0 = vector.load %arg8[%c0, %c0_0] : memref<5x128xf32, #tpu.memory_space<vmem>>, vector<5x128xf32>
    %c0_1 = arith.constant 0 : index
    %c0_2 = arith.constant 0 : index
    %1 = vector.load %arg1[%c0_1, %c0_2] : memref<16x32xbf16, #tpu.memory_space<vmem>>, vector<16x32xbf16>
    %c0_3 = arith.constant 0 : index
    %c0_4 = arith.constant 0 : index
    %2 = vector.load %arg3[%c0_3, %c0_4] : memref<32x128xbf16, #tpu.memory_space<vmem>>, vector<32x128xbf16>
    %cst = arith.constant dense<0.000000e+00> : vector<16x128xf32>
    %3 = tpu.matmul %1, %2, %cst {dimension_numbers = #tpu.dot_dimension_numbers<[1], [0], [0], [1], [0, 0, 1, 1], [], []>} : vector<16x32xbf16>, vector<32x128xbf16>, vector<16x128xf32> -> vector<16x128xf32>
    %4 = vector.extract_strided_slice %0 {offsets = [0, 0], sizes = [1, 128], strides = [1, 1]} : vector<5x128xf32> to vector<1x128xf32>
    %5 = vector.broadcast %4 : vector<1x128xf32> to vector<16x128xf32>
    %6 = arith.addf %3, %5 : vector<16x128xf32>
    %cst_5 = arith.constant 0.000000e+00 : f32
    %7 = vector.broadcast %cst_5 : f32 to vector<16x128xf32>
    %8 = arith.maximumf %6, %7 : vector<16x128xf32>
    %9 = arith.truncf %8 : vector<16x128xf32> to vector<16x128xbf16>
    %c0_6 = arith.constant 0 : index
    %c0_7 = arith.constant 0 : index
    %10 = vector.load %arg4[%c0_6, %c0_7] : memref<128x128xbf16, #tpu.memory_space<vmem>>, vector<128x128xbf16>
    %cst_8 = arith.constant dense<0.000000e+00> : vector<16x128xf32>
    %11 = tpu.matmul %9, %10, %cst_8 {dimension_numbers = #tpu.dot_dimension_numbers<[1], [0], [0], [1], [0, 0, 1, 1], [], []>} : vector<16x128xbf16>, vector<128x128xbf16>, vector<16x128xf32> -> vector<16x128xf32>
    %12 = vector.extract_strided_slice %0 {offsets = [1, 0], sizes = [1, 128], strides = [1, 1]} : vector<5x128xf32> to vector<1x128xf32>
    %13 = vector.broadcast %12 : vector<1x128xf32> to vector<16x128xf32>
    %14 = arith.addf %11, %13 : vector<16x128xf32>
    %cst_9 = arith.constant 0.000000e+00 : f32
    %15 = vector.broadcast %cst_9 : f32 to vector<16x128xf32>
    %16 = arith.maximumf %14, %15 : vector<16x128xf32>
    %17 = arith.truncf %16 : vector<16x128xf32> to vector<16x128xbf16>
    %c0_10 = arith.constant 0 : index
    %c0_11 = arith.constant 0 : index
    %18 = vector.load %arg5[%c0_10, %c0_11] : memref<128x128xbf16, #tpu.memory_space<vmem>>, vector<128x128xbf16>
    %cst_12 = arith.constant dense<0.000000e+00> : vector<16x128xf32>
    %19 = tpu.matmul %17, %18, %cst_12 {dimension_numbers = #tpu.dot_dimension_numbers<[1], [0], [0], [1], [0, 0, 1, 1], [], []>} : vector<16x128xbf16>, vector<128x128xbf16>, vector<16x128xf32> -> vector<16x128xf32>
    %20 = vector.extract_strided_slice %0 {offsets = [2, 0], sizes = [1, 128], strides = [1, 1]} : vector<5x128xf32> to vector<1x128xf32>
    %21 = vector.broadcast %20 : vector<1x128xf32> to vector<16x128xf32>
    %22 = arith.addf %19, %21 : vector<16x128xf32>
    %cst_13 = arith.constant 0.000000e+00 : f32
    %23 = vector.broadcast %cst_13 : f32 to vector<16x128xf32>
    %24 = arith.maximumf %22, %23 : vector<16x128xf32>
    %25 = arith.truncf %24 : vector<16x128xf32> to vector<16x128xbf16>
    %c0_14 = arith.constant 0 : index
    %c0_15 = arith.constant 0 : index
    %26 = vector.load %arg13[%c0_14, %c0_15] : memref<16x128xbf16, #tpu.memory_space<vmem>>, vector<16x128xbf16>
    tpu.vector_store %arg13[%c0_14, %c0_15], %25 {strides = array<i32>} : memref<16x128xbf16, #tpu.memory_space<vmem>>, vector<16x128xbf16>,
    %27 = arith.truncf %24 : vector<16x128xf32> to vector<16x128xbf16>
    %c0_16 = arith.constant 0 : index
    %c0_17 = arith.constant 0 : index
    %28 = vector.load %arg6[%c0_16, %c0_17] : memref<128x128xbf16, #tpu.memory_space<vmem>>, vector<128x128xbf16>
    %cst_18 = arith.constant dense<0.000000e+00> : vector<16x128xf32>
    %29 = tpu.matmul %27, %28, %cst_18 {dimension_numbers = #tpu.dot_dimension_numbers<[1], [0], [0], [1], [0, 0, 1, 1], [], []>} : vector<16x128xbf16>, vector<128x128xbf16>, vector<16x128xf32> -> vector<16x128xf32>
    %30 = vector.extract_strided_slice %0 {offsets = [3, 0], sizes = [1, 128], strides = [1, 1]} : vector<5x128xf32> to vector<1x128xf32>
    %31 = vector.broadcast %30 : vector<1x128xf32> to vector<16x128xf32>
    %32 = arith.addf %29, %31 : vector<16x128xf32>
    %cst_19 = arith.constant 0.000000e+00 : f32
    %33 = vector.broadcast %cst_19 : f32 to vector<16x128xf32>
    %34 = arith.maximumf %32, %33 : vector<16x128xf32>
    %35 = arith.truncf %34 : vector<16x128xf32> to vector<16x128xbf16>
    %c0_20 = arith.constant 0 : index
    %c0_21 = arith.constant 0 : index
    %36 = vector.load %arg7[%c0_20, %c0_21] : memref<128x128xbf16, #tpu.memory_space<vmem>>, vector<128x128xbf16>
    %cst_22 = arith.constant dense<0.000000e+00> : vector<16x128xf32>
    %37 = tpu.matmul %35, %36, %cst_22 {dimension_numbers = #tpu.dot_dimension_numbers<[1], [0], [0], [1], [0, 0, 1, 1], [], []>} : vector<16x128xbf16>, vector<128x128xbf16>, vector<16x128xf32> -> vector<16x128xf32>
    %38 = vector.extract_strided_slice %0 {offsets = [4, 0], sizes = [1, 128], strides = [1, 1]} : vector<5x128xf32> to vector<1x128xf32>
    %39 = vector.broadcast %38 : vector<1x128xf32> to vector<16x128xf32>
    %40 = arith.addf %37, %39 : vector<16x128xf32>
    %41 = arith.negf %40 : vector<16x128xf32>
    %42 = math.exp %41 : vector<16x128xf32>
    %cst_23 = arith.constant 1.000000e+00 : f32
    %43 = vector.broadcast %cst_23 : f32 to vector<16x128xf32>
    %44 = arith.addf %43, %42 : vector<16x128xf32>
    %45 = arith.divf %43, %44 : vector<16x128xf32>
    %46 = arith.truncf %45 : vector<16x128xf32> to vector<16x128xbf16>
    %c0_24 = arith.constant 0 : index
    %c0_25 = arith.constant 0 : index
    %47 = vector.load %arg14[%c0_24, %c0_25] : memref<16x128xbf16, #tpu.memory_space<vmem>>, vector<16x128xbf16>
    tpu.vector_store %arg14[%c0_24, %c0_25], %46 {strides = array<i32>} : memref<16x128xbf16, #tpu.memory_space<vmem>>, vector<16x128xbf16>,
    %c0_26 = arith.constant 0 : index
    %c0_27 = arith.constant 0 : index
    %48 = vector.load %arg12[%c0_26, %c0_27] : memref<3x128xf32, #tpu.memory_space<vmem>>, vector<3x128xf32>
    %c0_28 = arith.constant 0 : index
    %c0_29 = arith.constant 0 : index
    %49 = vector.load %arg2[%c0_28, %c0_29] : memref<16x40xbf16, #tpu.memory_space<vmem>>, vector<16x40xbf16>
    %c0_30 = arith.constant 0 : index
    %c0_31 = arith.constant 0 : index
    %50 = vector.load %arg9[%c0_30, %c0_31] : memref<40x128xbf16, #tpu.memory_space<vmem>>, vector<40x128xbf16>
    %cst_32 = arith.constant dense<0.000000e+00> : vector<16x128xf32>
    %51 = tpu.matmul %49, %50, %cst_32 {dimension_numbers = #tpu.dot_dimension_numbers<[1], [0], [0], [1], [0, 0, 1, 1], [], []>} : vector<16x40xbf16>, vector<40x128xbf16>, vector<16x128xf32> -> vector<16x128xf32>
    %52 = vector.extract_strided_slice %48 {offsets = [0, 0], sizes = [1, 128], strides = [1, 1]} : vector<3x128xf32> to vector<1x128xf32>
    %53 = vector.broadcast %52 : vector<1x128xf32> to vector<16x128xf32>
    %54 = arith.addf %51, %53 : vector<16x128xf32>
    %cst_33 = arith.constant 0.000000e+00 : f32
    %55 = vector.broadcast %cst_33 : f32 to vector<16x128xf32>
    %56 = arith.maximumf %54, %55 : vector<16x128xf32>
    %57 = arith.truncf %56 : vector<16x128xf32> to vector<16x128xbf16>
    %c0_34 = arith.constant 0 : index
    %c0_35 = arith.constant 0 : index
    %58 = vector.load %arg10[%c0_34, %c0_35] : memref<128x128xbf16, #tpu.memory_space<vmem>>, vector<128x128xbf16>
    %cst_36 = arith.constant dense<0.000000e+00> : vector<16x128xf32>
    %59 = tpu.matmul %57, %58, %cst_36 {dimension_numbers = #tpu.dot_dimension_numbers<[1], [0], [0], [1], [0, 0, 1, 1], [], []>} : vector<16x128xbf16>, vector<128x128xbf16>, vector<16x128xf32> -> vector<16x128xf32>
    %60 = vector.extract_strided_slice %48 {offsets = [1, 0], sizes = [1, 128], strides = [1, 1]} : vector<3x128xf32> to vector<1x128xf32>
    %61 = vector.broadcast %60 : vector<1x128xf32> to vector<16x128xf32>
    %62 = arith.addf %59, %61 : vector<16x128xf32>
    %cst_37 = arith.constant 0.000000e+00 : f32
    %63 = vector.broadcast %cst_37 : f32 to vector<16x128xf32>
    %64 = arith.maximumf %62, %63 : vector<16x128xf32>
    %65 = arith.truncf %64 : vector<16x128xf32> to vector<16x128xbf16>
    %c0_38 = arith.constant 0 : index
    %c0_39 = arith.constant 0 : index
    %66 = vector.load %arg15[%c0_38, %c0_39] : memref<16x128xbf16, #tpu.memory_space<vmem>>, vector<16x128xbf16>
    tpu.vector_store %arg15[%c0_38, %c0_39], %65 {strides = array<i32>} : memref<16x128xbf16, #tpu.memory_space<vmem>>, vector<16x128xbf16>,
    %67 = arith.truncf %64 : vector<16x128xf32> to vector<16x128xbf16>
    %c0_40 = arith.constant 0 : index
    %c0_41 = arith.constant 0 : index
    %68 = vector.load %arg11[%c0_40, %c0_41] : memref<128x128xbf16, #tpu.memory_space<vmem>>, vector<128x128xbf16>
    %cst_42 = arith.constant dense<0.000000e+00> : vector<16x128xf32>
    %69 = tpu.matmul %67, %68, %cst_42 {dimension_numbers = #tpu.dot_dimension_numbers<[1], [0], [0], [1], [0, 0, 1, 1], [], []>} : vector<16x128xbf16>, vector<128x128xbf16>, vector<16x128xf32> -> vector<16x128xf32>
    %70 = vector.extract_strided_slice %48 {offsets = [2, 0], sizes = [1, 128], strides = [1, 1]} : vector<3x128xf32> to vector<1x128xf32>
    %71 = vector.broadcast %70 : vector<1x128xf32> to vector<16x128xf32>
    %72 = arith.addf %69, %71 : vector<16x128xf32>
    %73 = arith.negf %72 : vector<16x128xf32>
    %74 = math.exp %73 : vector<16x128xf32>
    %cst_43 = arith.constant 1.000000e+00 : f32
    %75 = vector.broadcast %cst_43 : f32 to vector<16x128xf32>
    %76 = arith.addf %75, %74 : vector<16x128xf32>
    %77 = arith.divf %75, %76 : vector<16x128xf32>
    %78 = arith.truncf %77 : vector<16x128xf32> to vector<16x128xbf16>
    %c0_44 = arith.constant 0 : index
    %c0_45 = arith.constant 0 : index
    %79 = vector.load %arg16[%c0_44, %c0_45] : memref<16x128xbf16, #tpu.memory_space<vmem>>, vector<16x128xbf16>
    tpu.vector_store %arg16[%c0_44, %c0_45], %78 {strides = array<i32>} : memref<16x128xbf16, #tpu.memory_space<vmem>>, vector<16x128xbf16>,
    return
  }
  func.func @transform_0(%arg0: i32) -> (i32, i32) {
    %c0_i32 = arith.constant 0 : i32
    %c0_i32_0 = arith.constant 0 : i32
    return %arg0, %c0_i32 : i32, i32
  }
  func.func @transform_1(%arg0: i32) -> (i32, i32) {
    %c0_i32 = arith.constant 0 : i32
    %c0_i32_0 = arith.constant 0 : i32
    return %arg0, %c0_i32 : i32, i32
  }
  func.func @transform_2(%arg0: i32) -> (i32, i32) {
    %c0_i32 = arith.constant 0 : i32
    %c0_i32_0 = arith.constant 0 : i32
    %c0_i32_1 = arith.constant 0 : i32
    return %c0_i32, %c0_i32_0 : i32, i32
  }
  func.func @transform_3(%arg0: i32) -> (i32, i32) {
    %c0_i32 = arith.constant 0 : i32
    %c0_i32_0 = arith.constant 0 : i32
    %c0_i32_1 = arith.constant 0 : i32
    return %c0_i32, %c0_i32_0 : i32, i32
  }
  func.func @transform_4(%arg0: i32) -> (i32, i32) {
    %c0_i32 = arith.constant 0 : i32
    %c0_i32_0 = arith.constant 0 : i32
    %c0_i32_1 = arith.constant 0 : i32
    return %c0_i32, %c0_i32_0 : i32, i32
  }
  func.func @transform_5(%arg0: i32) -> (i32, i32) {
    %c0_i32 = arith.constant 0 : i32
    %c0_i32_0 = arith.constant 0 : i32
    %c0_i32_1 = arith.constant 0 : i32
    return %c0_i32, %c0_i32_0 : i32, i32
  }
  func.func @transform_6(%arg0: i32) -> (i32, i32) {
    %c0_i32 = arith.constant 0 : i32
    %c0_i32_0 = arith.constant 0 : i32
    %c0_i32_1 = arith.constant 0 : i32
    return %c0_i32, %c0_i32_0 : i32, i32
  }
  func.func @transform_7(%arg0: i32) -> (i32, i32) {
    %c0_i32 = arith.constant 0 : i32
    %c0_i32_0 = arith.constant 0 : i32
    %c0_i32_1 = arith.constant 0 : i32
    return %c0_i32, %c0_i32_0 : i32, i32
  }
  func.func @transform_8(%arg0: i32) -> (i32, i32) {
    %c0_i32 = arith.constant 0 : i32
    %c0_i32_0 = arith.constant 0 : i32
    %c0_i32_1 = arith.constant 0 : i32
    return %c0_i32, %c0_i32_0 : i32, i32
  }
  func.func @transform_9(%arg0: i32) -> (i32, i32) {
    %c0_i32 = arith.constant 0 : i32
    %c0_i32_0 = arith.constant 0 : i32
    %c0_i32_1 = arith.constant 0 : i32
    return %c0_i32, %c0_i32_0 : i32, i32
  }
  func.func @transform_10(%arg0: i32) -> (i32, i32) {
    %c0_i32 = arith.constant 0 : i32
    %c0_i32_0 = arith.constant 0 : i32
    %c0_i32_1 = arith.constant 0 : i32
    return %c0_i32, %c0_i32_0 : i32, i32
  }
  func.func @transform_11(%arg0: i32) -> (i32, i32) {
    %c0_i32 = arith.constant 0 : i32
    %c0_i32_0 = arith.constant 0 : i32
    %c0_i32_1 = arith.constant 0 : i32
    return %c0_i32, %c0_i32_0 : i32, i32
  }
  func.func @transform_12(%arg0: i32) -> (i32, i32) {
    %c0_i32 = arith.constant 0 : i32
    %c0_i32_0 = arith.constant 0 : i32
    return %arg0, %c0_i32 : i32, i32
  }
  func.func @transform_13(%arg0: i32) -> (i32, i32) {
    %c0_i32 = arith.constant 0 : i32
    %c0_i32_0 = arith.constant 0 : i32
    return %arg0, %c0_i32 : i32, i32
  }
  func.func @transform_14(%arg0: i32) -> (i32, i32) {
    %c0_i32 = arith.constant 0 : i32
    %c0_i32_0 = arith.constant 0 : i32
    return %arg0, %c0_i32 : i32, i32
  }
  func.func @transform_15(%arg0: i32) -> (i32, i32) {
    %c0_i32 = arith.constant 0 : i32
    %c0_i32_0 = arith.constant 0 : i32
    return %arg0, %c0_i32 : i32, i32
  }
}

</mosaic_0001>

<bundles_post_ra>
// kernel: tpu_custom_call.1
= control target key start
LH: loop header
LB: loop body
LE: loop exit
PB: predicated region body
PF: predicated region fallthrough
CT: control target
= control target key end

     0   :  { %s3616_s0 = inlined_call_operand.hbm [shape: bf16[32,32], index: 0, kind: input, shape index: {}]   ;;  %s3617_s1 = inlined_call_operand.hbm [shape: bf16[32,40], index: 1, kind: input, shape index: {}]   ;;  %s3618_s2 = inlined_call_operand.hbm [shape: bf16[32,128], index: 2, kind: input, shape index: {}]   ;;  %s3619_s3 = inlined_call_operand.hbm [shape: bf16[128,128], index: 3, kind: input, shape index: {}]   ;;  %s3620_s4 = inlined_call_operand.hbm [shape: bf16[128,128], index: 4, kind: input, shape index: {}]   ;;  %s3621_s5 = inlined_call_operand.hbm [shape: bf16[128,128], index: 5, kind: input, shape index: {}]   ;;  %s3622_s6 = inlined_call_operand.hbm [shape: bf16[128,128], index: 6, kind: input, shape index: {}]   ;;  %s3623_s7 = inlined_call_operand.vmem [shape: f32[5,128], index: 7, kind: input, shape index: {}]   ;;  %s3624_s8 = inlined_call_operand.hbm [shape: bf16[40,128], index: 8, kind: input, shape index: {}]   ;;  %s3625_s9 = inlined_call_operand.hbm [shape: bf16[128,128], index: 9, kind: input, shape index: {}]   ;;  %s3626_s10 = inlined_call_operand.hbm [shape: bf16[128,128], index: 10, kind: input, shape index: {}]   ;;  %s3627_s11 = inlined_call_operand.vmem [shape: f32[3,128], index: 11, kind: input, shape index: {}]   ;;  %s3628_s12 = inlined_call_operand.hbm [shape: bf16[32,128], index: 12, kind: output, shape index: {0}]   ;;  %s3629_s13 = inlined_call_operand.hbm [shape: bf16[32,128], index: 13, kind: output, shape index: {1}]   ;;  %s3630_s14 = inlined_call_operand.hbm [shape: bf16[32,128], index: 14, kind: output, shape index: {2}]   ;;  %s3631_s15 = inlined_call_operand.hbm [shape: bf16[32,128], index: 15, kind: output, shape index: {3}]  }
   0x1   :  { %3642 = sst [smem:[#allocation36_spill]] %s3616_s0 }
   0x2   :  { %3643 = sst [smem:[#allocation37_spill]] %s3617_s1 }
   0x3   :  { %3644 = sst [smem:[#allocation38_spill]] %s3618_s2 }
   0x4   :  { %3645 = sst [smem:[#allocation39_spill]] %s3619_s3 }
   0x5   :  { %3646 = sst [smem:[#allocation40_spill]] %s3620_s4 }
   0x6   :  { %3647 = sst [smem:[#allocation41_spill]] %s3621_s5 }
   0x7   :  { %3648 = sst [smem:[#allocation42_spill]] %s3622_s6 }
   0x8   :  { %3649 = sst [smem:[#allocation43_spill]] %s3623_s7 }
   0x9   :  { %3650 = sst [smem:[#allocation44_spill]] %s3624_s8 }
   0xa   :  { %3651 = sst [smem:[#allocation45_spill]] %s3625_s9 }
   0xb   :  { %3652 = sst [smem:[#allocation46_spill]] %s3626_s10 }
   0xc   :  { %3653 = sst [smem:[#allocation47_spill]] %s3630_s14 }
   0xd   :  { %3654 = sst [smem:[#allocation48_spill]] %s3631_s15 }
   0xe   :  { %21 = vsyncpa [#allocation3], 0 }
   0xf   :  { %23 = vsyncpa [#allocation3 + $0x1], 0 }
  0x10   :  { %24 = vsyncpa [#allocation6], 0 }
  0x11   :  { %26 = vsyncpa [#allocation6 + $0x1], 0 }
  0x12   :  { %27 = vsyncpa [#allocation9], 0 }
  0x13   :  { %28 = vsyncpa [#allocation12], 0 }
  0x14   :  { %29 = vsyncpa [#allocation15], 0 }
  0x15   :  { %30 = vsyncpa [#allocation18], 0 }
  0x16   :  { %31 = vsyncpa [#allocation4], 0 }
  0x17   :  { %33 = vsyncpa [#allocation4 + $0x1], 0 }
  0x18   :  { %34 = vsyncpa [#allocation21], 0 }
  0x19   :  { %36 = vsyncpa [#allocation21 + $0x1], 0 }
  0x1a   :  { %37 = vsyncpa [#allocation24], 0 }
  0x1b   :  { %39 = vsyncpa [#allocation24 + $0x1], 0  ;;  %s3046_s18 = smov 0   ;;  %s3048_s19 = smov 0  }
  0x1c   :  { %s3050_s20 = smov 0   ;;  %s3052_s21 = smov 0  }
  0x1d LB: > { %s2946_s22 = smov [#allocation7]   ;;  %s3067_s24 = sadd.s32 4294967295, %s2944_s21   ;;  %s2944_s21 = sphi %s3052_s21, %s3698_s21   ;;  %s2940_s20 = sphi %s3050_s20, %s3697_s20   ;;  %s2936_s19 = sphi %s3048_s19, %s3696_s19   ;;  %s2932_s18 = sphi %s3046_s18, %s3695_s18  }
  0x1e   : > { %s428_s23 = sshll.u32 %s2946_s22, 4  ;;  %p1935_p0 = scmp.ge.s32.totalorder %s2944_s21, 1  ;;  %s429_s23 = int_to_ptr.vmem [resolvable:$true] %s428_s23 }
  0x1f   : > { %p3639_p1 = scmp.eq.s32.totalorder %s3067_s24, 0  ;;  %p416_p2 = scmp.lt.s32.totalorder %s2944_s21, 3 }
  0x20   : > { %s2947_s26 = smov [#allocation8]   ;;  %s2948_s29 = smov [#allocation11]  }
  0x21   : > { %p3072_p3 = pnand %p1935_p0, %p416_p2  ;;  %s441_s27 = sshll.u32 %s2947_s26, 4  ;;  %s3085_s27 = int_to_ptr.vmem [resolvable:$true] %s441_s27 }
  0x22   : > { %s467_s30 = sshll.u32 %s2948_s29, 4  ;;  %s2517_s17 = scalar_lea.vmem %s429_s23, 256  ;;  %s3087_s30 = int_to_ptr.vmem [resolvable:$true] %s467_s30 }
  0x23   : > { %p2326_p5 = pneg %p3072_p3  ;;  %p2518_p8 = scmp.ne.s32.totalorder %s429_s23, %s2517_s17 }
  0x24   : > { %p2525_p11 = scmp.lt.s32.totalorder %s429_s23, %s429_s23  ;;  %p2526_p12 = scmp.lt.s32.totalorder %s2517_s17, %s2517_s17 }
  0x25   : > { %p3081_p6 = pnand %p2326_p5, %p3639_p1 }
  0x26   : > { %p2527_p13 = por %p2526_p12, %p2525_p11 }
  0x27   : > { %p3091_p7 = pneg %p3081_p6 }
  0x29   : > { %p2520_p9 = pnand %p2518_p8, %p3091_p7 }
  0x2b   : > { %p2521_p10 = pneg %p2520_p9 }
  0x2d   : > { %p2528_p0 = pnand %p2527_p13, %p2521_p10 }
  0x2f   : > { %2531 = shalt.err (!%p2528_p0)
}
  0x30   : > { %s3634_s22 = smov 64   ;;  %s3636_s26 = smov 4  }
  0x31   : > { %s3658_s2 = sld [smem:[#allocation38_spill]]  ;;  %s2543_s14 = scalar_lea.vmem %s3085_s27, 1024 }
  0x32   : > { %p2544_p2 = scmp.ne.s32.totalorder %s3085_s27, %s2543_s14  ;;  %p2551_p9 = scmp.lt.s32.totalorder %s3085_s27, %s3085_s27 }
  0x33   : > { %p2552_p10 = scmp.lt.s32.totalorder %s2543_s14, %s2543_s14 }
  0x34   : > { %p2546_p5 = pnand %p2544_p2, %p3091_p7 }
  0x35   : > { %p2553_p11 = por %p2552_p10, %p2551_p9 }
  0x36   : > { %p2547_p8 = pneg %p2546_p5 }
  0x37   : > { %2329 = dma.hbm_to_vmem [thread:$0]  (!%p3081_p6), %s3658_s2, 256, %s429_s23, [#allocation6], %s3634_s22, %s3634_s22, %s3636_s26  }
  0x38   : > { %p2554_p12 = pnand %p2553_p11, %p2547_p8 }
  0x3a   : > { %2557 = shalt.err (!%p2554_p12)
}
  0x3b   : > { %s3659_s3 = sld [smem:[#allocation39_spill]]  ;;  %s2569_s23 = scalar_lea.vmem %s3087_s30, 1024 }
  0x3c   : > { %p2570_p13 = scmp.ne.s32.totalorder %s3087_s30, %s2569_s23  ;;  %p2577_p5 = scmp.lt.s32.totalorder %s3087_s30, %s3087_s30 }
  0x3d   : > { %p2578_p8 = scmp.lt.s32.totalorder %s2569_s23, %s2569_s23 }
  0x3e   : > { %p2572_p0 = pnand %p2570_p13, %p3091_p7 }
  0x3f   : > { %p2579_p9 = por %p2578_p8, %p2577_p5 }
  0x40   : > { %p2573_p2 = pneg %p2572_p0 }
  0x41   : > { %2332 = dma.hbm_to_vmem [thread:$0]  (!%p3081_p6), %s3659_s3, 1024, %s3085_s27, [#allocation9], %s3634_s22, %s3634_s22, %s3636_s26  }
  0x42   : > { %p2580_p10 = pnand %p2579_p9, %p2573_p2 }
  0x44   : > { %2583 = shalt.err (!%p2580_p10)
}
  0x45   : > { %s3660_s5 = sld [smem:[#allocation41_spill]]  ;;  %s2951_s27 = smov [#allocation14]  }
  0x46   : > { %s496_s17 = sshll.u32 %s2951_s27, 4  ;;  %s2952_s15 = smov [#allocation10]   ;;  %s497_s17 = int_to_ptr.vmem [resolvable:$true] %s496_s17 }
  0x47   : > { %s454_s2 = sshll.u32 %s2952_s15, 4  ;;  %s2595_s23 = scalar_lea.vmem %s497_s17, 320  ;;  %s455_s2 = int_to_ptr.vmem [resolvable:$true] %s454_s2 }
  0x48   : > { %p2596_p11 = scmp.ne.s32.totalorder %s497_s17, %s2595_s23  ;;  %p2603_p0 = scmp.lt.s32.totalorder %s497_s17, %s497_s17 }
  0x49   : > { %p2604_p2 = scmp.lt.s32.totalorder %s2595_s23, %s2595_s23 }
  0x4a   : > { %p2598_p12 = pnand %p2596_p11, %p3091_p7 }
  0x4b   : > { %2338 = dma.hbm_to_vmem [thread:$0]  (!%p3081_p6), %s3660_s5, 1024, %s3087_s30, [#allocation12], %s3634_s22, %s3634_s22, %s3636_s26  }
  0x4c   : > { %p2599_p13 = pneg %p2598_p12  ;;  %p2605_p5 = por %p2604_p2, %p2603_p0 }
  0x4e   : > { %p2606_p8 = pnand %p2605_p5, %p2599_p13 }
  0x50   : > { %2609 = shalt.err (!%p2606_p8)
}
  0x51   : > { %s3661_s8 = sld [smem:[#allocation44_spill]]  ;;  %s2621_s29 = scalar_lea.vmem %s455_s2, 1024 }
  0x52   : > { %p2622_p9 = scmp.ne.s32.totalorder %s455_s2, %s2621_s29  ;;  %p2629_p12 = scmp.lt.s32.totalorder %s455_s2, %s455_s2 }
  0x53   : > { %p2630_p0 = scmp.lt.s32.totalorder %s2621_s29, %s2621_s29 }
  0x54   : > { %p2624_p10 = pnand %p2622_p9, %p3091_p7 }
  0x55   : > { %p2631_p13 = por %p2630_p0, %p2629_p12 }
  0x56   : > { %p2625_p11 = pneg %p2624_p10 }
  0x57   : > { %2344 = dma.hbm_to_vmem [thread:$0]  (!%p3081_p6), %s3661_s8, 320, %s497_s17, [#allocation15], %s3634_s22, %s3634_s22, %s3636_s26  }
  0x58   : > { %p2632_p2 = pnand %p2631_p13, %p2625_p11 }
  0x5a   : > { %2635 = shalt.err (!%p2632_p2)
}
  0x5b   : > { %s3662_s4 = sld [smem:[#allocation40_spill]]  ;;  %s2953_s17 = smov [#allocation13]  }
  0x5c   : > { %s480_s23 = sshll.u32 %s2953_s17, 4  ;;  %s2954_s30 = smov [#allocation16]   ;;  %s481_s23 = int_to_ptr.vmem [resolvable:$true] %s480_s23 }
  0x5d   : > { %s509_s14 = sshll.u32 %s2954_s30, 4  ;;  %s2647_s3 = scalar_lea.vmem %s481_s23, 1024  ;;  %s510_s14 = int_to_ptr.vmem [resolvable:$true] %s509_s14 }
  0x5e   : > { %p2648_p5 = scmp.ne.s32.totalorder %s481_s23, %s2647_s3  ;;  %p2655_p10 = scmp.lt.s32.totalorder %s481_s23, %s481_s23 }
  0x5f   : > { %p2656_p11 = scmp.lt.s32.totalorder %s2647_s3, %s2647_s3 }
  0x60   : > { %p2650_p8 = pnand %p2648_p5, %p3091_p7 }
  0x61   : > { %2335 = dma.hbm_to_vmem [thread:$0]  (!%p3081_p6), %s3662_s4, 1024, %s455_s2, [#allocation9], %s3634_s22, %s3634_s22, %s3636_s26  }
  0x62   : > { %p2651_p9 = pneg %p2650_p8  ;;  %p2657_p12 = por %p2656_p11, %p2655_p10 }
  0x64   : > { %p2658_p0 = pnand %p2657_p12, %p2651_p9 }
  0x66   : > { %2661 = shalt.err (!%p2658_p0)
}
  0x67   : > { %s3663_s6 = sld [smem:[#allocation42_spill]]  ;;  %s2673_s27 = scalar_lea.vmem %s510_s14, 1024 }
  0x68   : > { %p2674_p13 = scmp.ne.s32.totalorder %s510_s14, %s2673_s27  ;;  %p2681_p8 = scmp.lt.s32.totalorder %s510_s14, %s510_s14 }
  0x69   : > { %p2682_p10 = scmp.lt.s32.totalorder %s2673_s27, %s2673_s27 }
  0x6a   : > { %p2676_p2 = pnand %p2674_p13, %p3091_p7 }
  0x6b   : > { %p2683_p9 = por %p2682_p10, %p2681_p8 }
  0x6c   : > { %p2677_p5 = pneg %p2676_p2 }
  0x6d   : > { %2341 = dma.hbm_to_vmem [thread:$0]  (!%p3081_p6), %s3663_s6, 1024, %s481_s23, [#allocation12], %s3634_s22, %s3634_s22, %s3636_s26  }
  0x6e   : > { %p2684_p11 = pnand %p2683_p9, %p2677_p5 }
  0x70   : > { %2687 = shalt.err (!%p2684_p11)
}
  0x71   : > { %s3664_s9 = sld [smem:[#allocation45_spill]]  ;;  %s2955_s17 = smov [#allocation17]  }
  0x72   : > { %s522_s23 = sshll.u32 %s2955_s17, 4  ;;  %s523_s23 = int_to_ptr.vmem [resolvable:$true] %s522_s23 }
  0x73   : > { %s2699_s30 = scalar_lea.vmem %s523_s23, 1024  ;;  %p2707_p2 = scmp.lt.s32.totalorder %s523_s23, %s523_s23 }
  0x74   : > { %p2700_p12 = scmp.ne.s32.totalorder %s523_s23, %s2699_s30  ;;  %p2708_p5 = scmp.lt.s32.totalorder %s2699_s30, %s2699_s30 }
  0x76   : > { %p2702_p0 = pnand %p2700_p12, %p3091_p7  ;;  %p2709_p8 = por %p2708_p5, %p2707_p2 }
  0x77   : > { %2347 = dma.hbm_to_vmem [thread:$0]  (!%p3081_p6), %s3664_s9, 1024, %s510_s14, [#allocation15], %s3634_s22, %s3634_s22, %s3636_s26  }
  0x78   : > { %p2703_p13 = pneg %p2702_p0 }
  0x7a   : > { %p2710_p10 = pnand %p2709_p8, %p2703_p13 }
  0x7c   : > { %2713 = shalt.err (!%p2710_p10)
}
  0x7d   : > { %s3665_s10 = sld [smem:[#allocation46_spill]]  ;;  %s3638_s28 = sadd.s32 4294967294, %s2944_s21  }
  0x7e   : > { %s3187_s16 = sadd.s32 1, %s2944_s21   ;;  %s52_s27 = sadd.s32 1, %s2940_s20 }
  0x7f   : > { %s49_s29 = ssub.s32 %s2944_s21, %s3187_s16  ;;  %p59_p9 = scmp.ne.s32.totalorder %s2940_s20, %s2936_s19 }
  0x80   : > { %p50_p7 = scmp.eq.s32.totalorder %s49_s29, 0  ;;  %p60_p11 = scmp.eq.s32.totalorder %s2944_s21, 0 }
  0x81   : > { %p65_p12 = scmp.ne.s32.totalorder %s2936_s19, %s2932_s18  ;;  %p325_p13 = scmp.eq.s32.totalorder %s3067_s24, 1 }
  0x82   : > { %s3198_s3 = scalar_select %p50_p7, %s2940_s20, %s52_s27  }
  0x83   : > { %2350 = dma.hbm_to_vmem [thread:$0]  (!%p3081_p6), %s3665_s10, 1024, %s523_s23, [#allocation18], %s3634_s22, %s3634_s22, %s3636_s26  }
  0x84   : > { %3666 = sst [smem:[#allocation35_spill]] %s3198_s3  ;;  %p3200_p0 = por %p60_p11, %p59_p9 }
  0x85   : > { %p3206_p6 = por %p3639_p1, %p65_p12  ;;  %p331_p2 = scmp.eq.s32.totalorder %s3638_s28, 1 }
  0x86   : > { %p2379_p5 = scmp.lt.s32.totalorder %s2944_s21, 2  ;;  %s539_s23 = sand.u32 1, %s2940_s20  }
  0x87   : > { %s3668_s17 = scalar_select %p3206_p6, 1, 0 }
  0x88   : > { %p3215_p8 = por %p325_p13, %p59_p9  ;;  %p3219_p10 = por %p331_p2, %p65_p12 }
  0x89   : > { %s1945_s14 = sshll.u32 %s539_s23, 3  ;;  %s2049_s29 = sshll.u32 %s2944_s21, 7 }
  0x8a   : > { %s3669_s30 = scalar_select %p3215_p8, 1, 0 }
  0x8b   : > { %s3670_s2 = scalar_select %p3219_p10, 1, 0 }
  0x8c   : > { %s3671_s0 = sld [smem:[#allocation36_spill]]  ;;  %s543_s28 = scalar_lea.vmem [#allocation2], %s1945_s14 }
  0x8d   : > { %s550_s4 = sshll.u32 %s543_s28, 4  ;;  %p3233_p7 = pnand %p2379_p5, %p3200_p0  ;;  %s3229_s4 = int_to_ptr.vmem [resolvable:$true] %s550_s4 }
  0x8e   : > { %s3673_s1 = sld [smem:[#allocation37_spill]]  ;;  %s564_s27 = scalar_lea.vmem [#allocation5], %s1945_s14 }
  0x8f   : > { %s3242_s9 = sshll.u32 %s564_s27, 4  ;;  %s3244_s10 = scalar_lea.sflag [#allocation3], %s539_s23  ;;  %s3275_s9 = int_to_ptr.vmem [resolvable:$true] %s3242_s9 }
  0x90   : > { %p2716_p11 = pneg %p3233_p7 }
  0x92   : > { %s3227_s26 = scalar_lea.hbm %s3671_s0, %s2049_s29  ;;  %s2719_s6 = scalar_lea.hbm %s3671_s0, 256 }
  0x93   : > { %s2714_s28 = scalar_lea.hbm %s3227_s26, 128  ;;  %p2720_p13 = scmp.lt.s32.totalorder %s3227_s26, %s3671_s0 }
  0x94   : > { %s3240_s22 = scalar_lea.hbm %s3673_s1, %s2049_s29  ;;  %p2715_p9 = scmp.ne.s32.totalorder %s3227_s26, %s2714_s28 }
  0x95   : > { %p2721_p2 = scmp.lt.s32.totalorder %s2719_s6, %s2714_s28 }
  0x96   : > { %p2717_p12 = pnand %p2716_p11, %p2715_p9 }
  0x97   : > { %p2722_p5 = por %p2721_p2, %p2720_p13 }
  0x98   : > { %p2718_p0 = pneg %p2717_p12 }
  0x9a   : > { %p2723_p4 = pnand %p2722_p5, %p2718_p0 }
  0x9c   : > { %2726 = shalt.err (!%p2723_p4)
}
  0x9d   : > { %s2727_s23 = scalar_lea.vmem %s3229_s4, 128  ;;  %s2956_s3 = smov [#allocation2]  }
  0x9e   : > { %p2728_p1 = scmp.ne.s32.totalorder %s3229_s4, %s2727_s23  ;;  %s2732_s14 = sshll.u32 %s2956_s3, 4  ;;  %s2733_s14 = int_to_ptr.vmem [resolvable:$false] %s2732_s14 }
  0x9f   : > { %s2734_s27 = scalar_lea.vmem %s2733_s14, 256  ;;  %p2735_p10 = scmp.lt.s32.totalorder %s3229_s4, %s2733_s14 }
  0xa0   : > { %p2730_p9 = pnand %p2728_p1, %p2716_p11  ;;  %p2736_p8 = scmp.lt.s32.totalorder %s2734_s27, %s2727_s23 }
  0xa2   : > { %p2731_p12 = pneg %p2730_p9  ;;  %p2737_p6 = por %p2736_p8, %p2735_p10 }
  0xa4   : > { %p2738_p13 = pnand %p2737_p6, %p2731_p12 }
  0xa6   : > { %2741 = shalt.err (!%p2738_p13)
}
  0xa7   : > { %s3674_s28 = smov 4   ;;  %s3675_s15 = smov 64  }
  0xa8   : > { %2354 = dma.hbm_to_vmem [thread:$0]  (!%p3233_p7), %s3227_s26, 128, %s3229_s4, %s3244_s10, %s3675_s15, %s3675_s15, %s3674_s28  }
  0xa9   : > { %s560_s6 = sand.u32 1, %s2944_s21   ;;  %s2742_s29 = scalar_lea.hbm %s3240_s22, 128 }
  0xaa   : > { %s561_s8 = scalar_lea.sflag [#allocation6], %s560_s6  ;;  %p2743_p1 = scmp.ne.s32.totalorder %s3240_s22, %s2742_s29 }
  0xab   : > { %s2747_s14 = scalar_lea.hbm %s3673_s1, 256  ;;  %p2748_p8 = scmp.lt.s32.totalorder %s3240_s22, %s3673_s1 }
  0xac   : > { %p2745_p4 = pnand %p2743_p1, %p2716_p11  ;;  %p2749_p10 = scmp.lt.s32.totalorder %s2747_s14, %s2742_s29 }
  0xae   : > { %p2746_p6 = pneg %p2745_p4  ;;  %p2750_p0 = por %p2749_p10, %p2748_p8 }
  0xb0   : > { %p2751_p2 = pnand %p2750_p0, %p2746_p6 }
  0xb2   : > { %2754 = shalt.err (!%p2751_p2)
}
  0xb3   : > { %s2755_s4 = scalar_lea.vmem %s3275_s9, 128  ;;  %s2957_s10 = smov [#allocation5]  }
  0xb4   : > { %p2756_p5 = scmp.ne.s32.totalorder %s3275_s9, %s2755_s4  ;;  %s2760_s26 = sshll.u32 %s2957_s10, 4  ;;  %s2761_s26 = int_to_ptr.vmem [resolvable:$false] %s2760_s26 }
  0xb5   : > { %s2762_s6 = scalar_lea.vmem %s2761_s26, 256  ;;  %p2763_p13 = scmp.lt.s32.totalorder %s3275_s9, %s2761_s26 }
  0xb6   : > { %p2758_p9 = pnand %p2756_p5, %p2716_p11  ;;  %p2764_p1 = scmp.lt.s32.totalorder %s2762_s6, %s2755_s4 }
  0xb8   : > { %p2759_p12 = pneg %p2758_p9  ;;  %p2765_p4 = por %p2764_p1, %p2763_p13 }
  0xba   : > { %p2766_p8 = pnand %p2765_p4, %p2759_p12 }
  0xbc   : > { %2769 = shalt.err (!%p2766_p8)
}
  0xbd   : > { %2357 = dma.hbm_to_vmem [thread:$0]  (!%p3233_p7), %s3240_s22, 128, %s3275_s9, %s561_s8, %s3675_s15, %s3675_s15, %s3674_s28  }
  0xbe   : > { %583 = sbr.rel (%p3072_p3) target bundleno = 1517 (0x5ed), region = 68  ;;  %s3306_s0 = sand.u32 (!%p3072_p3), 1, %s2936_s19  }
  0xbf   : > { %s3309_s29 = sshll.u32 (!%p3072_p3), %s3306_s0, 3  ;;  %s586_s23 = scalar_lea.sflag (!%p3072_p3), [#allocation3], %s3306_s0 }
  0xc0   : > { %s589_s5 = scalar_lea.vmem (!%p3072_p3), [#allocation2], %s3309_s29  ;;  %p3676_p11 = scmp.ne.s32.totalorder (!%p3072_p3), %s3668_s17, 0 }
  0xc3   : > { %2891 = dma.done.wait (%p3676_p11), %s586_s23, 128  }
  0xc4   : > { %2893 = vsyncadd (%p3676_p11), %s586_s23, 4294967168  ;;  %s594_s9 = sand.u32 1, %s3067_s24   ;;  %s598_s22 = scalar_lea.vmem [#allocation5], %s3309_s29 }
  0xc5   : > { %s595_s25 = scalar_lea.sflag [#allocation6], %s594_s9 }
  0xc6   : > { %2895 = dma.done.wait (%p3676_p11), %s595_s25, 128  }
  0xc7   : > { %2897 = vsyncadd (%p3676_p11), %s595_s25, 4294967168  ;;  %p3677_p3 = scmp.eq.s32.totalorder %s3067_s24, 0 }
  0xc9   : > { %2899 = dma.done.wait (%p3677_p3), [#allocation6], 256   ;;  %p3678_p7 = pmov %p3677_p3 }
  0xca   : > { %p3679_p6 = pmov %p3677_p3 }
  0xcb   : > { %2901 = vsyncadd (%p3678_p7), [#allocation6], 4294967040 }
  0xcc   : > { %2903 = dma.done.wait (%p3679_p6), [#allocation9], 2048   ;;  %p3680_p10 = pmov %p3677_p3 }
  0xcd   : > { %p3681_p0 = pmov %p3677_p3 }
  0xce   : > { %2905 = vsyncadd (%p3680_p10), [#allocation9], 4294965248 }
  0xcf   : > { %2907 = dma.done.wait (%p3681_p0), [#allocation12], 2048   ;;  %p3682_p2 = pmov %p3681_p0 }
  0xd0   : > { %p3683_p5 = pmov %p3681_p0 }
  0xd1   : > { %2909 = vsyncadd (%p3682_p2), [#allocation12], 4294965248 }
  0xd2   : > { %2911 = dma.done.wait (%p3683_p5), [#allocation15], 1344   ;;  %p3684_p9 = pmov %p3681_p0 }
  0xd3   : > { %p3685_p12 = pmov %p3681_p0 }
  0xd4   : > { %2913 = vsyncadd (%p3684_p9), [#allocation15], 4294965952 }
  0xd5   : > { %2915 = dma.done.wait (%p3685_p12), [#allocation18], 1024   ;;  %p3686_p13 = pmov %p3681_p0 }
  0xd6   : > { %v2958_v0 = vmov 0.0   ;;  %vm2959_vm0 = vmmov 0   ;;  %v2435_v1 = vld [vmem:[#allocation7 + $0x8] sm:$0xff]   ;;  %v2436_v2 = vld [vmem:[#allocation7] sm:$0xff]   ;;  %vm732_vm1 = vcmask 261120   ;;  %v2440_v6 = vld [vmem:[#allocation8 + $0x28] sm:$0xff]   ;;  %v711_v17 = vlaneseq }
  0xd7   : > { %2917 = vsyncadd (%p3686_p13), [#allocation18], 4294966272  ;;  %2144 = vmatprep.subr.bf16.mxu0 %v2958_v0  ;;  %2148 = vmatprep.mubr.msk.bf16.mxu0 %vm2959_vm0, %v2958_v0  ;;  %v2438_v3 = vld [vmem:[#allocation8 + $0x38] sm:$0xff]   ;;  %v2439_v5 = vld [vmem:[#allocation8 + $0x30] sm:$0xff]   ;;  %s3687_s7 = sld [smem:[#allocation43_spill]]  ;;  %vm1292_vm2 = vcmask 1043456  }
  0xd8   : > { %2152 = vmatprep.subr.bf16.mxu1 %v2958_v0  ;;  %2168 = vmatprep.mubr.msk.bf16.mxu1 %vm2959_vm0, %v2958_v0  ;;  %v2437_v4 = vld [vmem:[%s589_s5] sm:$0xff]   ;;  %v2441_v7 = vld [vmem:[#allocation8 + $0x20] sm:$0xff]   ;;  %v2444_v10 = vld [vmem:[#allocation8 + $0x8] sm:$0xff]   ;;  %v3368_v18 = vshrl.u32 %v711_v17, 7  ;;  %s675_s15 = scalar_lea.vmem [#allocation19], %s3309_s29  ;;  %vm1288_vm3 = vcmask 326656  }
  0xd9   : > { %2145 = vmatpush3.bf16.msra.mxu0 %v2435_v1  ;;  %2153 = vmatpush3.bf16.msra.mxu1 %v2438_v3  ;;  %v2442_v8 = vld [vmem:[#allocation8 + $0x18] sm:$0xff]   ;;  %v2443_v9 = vld [vmem:[#allocation8 + $0x10] sm:$0xff]   ;;  %v2445_v11 = vld [vmem:[#allocation8] sm:$0xff]   ;;  %s682_s14 = scalar_lea.vmem [#allocation20], %s3309_s29  ;;  %s689_s27 = scalar_lea.vmem [#allocation22], %s3309_s29 }
  0xda   : > { %2146 = vmatprep.subr.bf16.mxu0 %v2958_v0  ;;  %2154 = vmatprep.subr.bf16.mxu1 %v2958_v0  ;;  %v2446_v12 = vld [vmem:[#allocation10 + $0x38] sm:$0xff]   ;;  %v2447_v13 = vld [vmem:[#allocation10 + $0x30] sm:$0xff]   ;;  %v2448_v14 = vld [vmem:[#allocation10 + $0x28] sm:$0xff]   ;;  %v713_v19 = vsub.s32 0, %v3368_v18  ;;  %v798_v39 = vsub.s32 1, %v3368_v18  ;;  %v910_v59 = vsub.s32 2, %v3368_v18 }
  0xdb   : > { %v2449_v15 = vld [vmem:[#allocation10 + $0x20] sm:$0xff]   ;;  %v2450_v16 = vld [vmem:[#allocation10 + $0x18] sm:$0xff]   ;;  %v2451_v31 = vld [vmem:[#allocation10 + $0x10] sm:$0xff]   ;;  %s1621_s4 = sshll.u32 %s675_s15, 4  ;;  %s1653_s10 = sshll.u32 %s689_s27, 4  ;;  %s3457_s4 = int_to_ptr.vmem [resolvable:$true] %s1621_s4  ;;  %s3459_s10 = int_to_ptr.vmem [resolvable:$true] %s1653_s10 }
  0xdc   : > { %v2452_v32 = vld [vmem:[#allocation10 + $0x8] sm:$0xff]   ;;  %v2453_v33 = vld [vmem:[#allocation10] sm:$0xff]   ;;  %v2454_v34 = vld [vmem:[#allocation11 + $0x38] sm:$0xff]   ;;  %s3462_s26 = sshll.u32 %s3067_s24, 7  ;;  %s1637_s25 = sshll.u32 %s682_s14, 4  ;;  %s3470_s25 = int_to_ptr.vmem [resolvable:$true] %s1637_s25 }
  0xdd   : > { %2147 = vmatpush3.bf16.msra.mxu0 %v2436_v2  ;;  %2155 = vmatpush3.bf16.msra.mxu1 %v2439_v5  ;;  %v3374_v20 = vld [vmem:[%s3687_s7] sm:$0x1f]  ;;  %v2456_v36 = vld [vmem:[#allocation11 + $0x28] sm:$0xff]   ;;  %v2457_v37 = vld [vmem:[#allocation11 + $0x20] sm:$0xff]   ;;  %s3468_s5 = scalar_lea.hbm %s3629_s13, %s3462_s26  ;;  %s2770_s17 = scalar_lea.vmem %s3470_s25, 128 }
  0xde   : > { %2172 = vmatprep.subr.bf16.mxu0 %v2958_v0  ;;  %2156 = vmatprep.subr.bf16.mxu1 %v2958_v0  ;;  %v714_v21 = vrot.slane %v3374_v20, %v713_v19  ;;  %v2455_v35 = vld [vmem:[#allocation11 + $0x30] sm:$0xff]   ;;  %v2458_v38 = vld [vmem:[#allocation11 + $0x18] sm:$0xff]   ;;  %v799_v40 = vrot.slane %v3374_v20, %v798_v39  ;;  %v2460_v51 = vld [vmem:[#allocation11 + $0x8] sm:$0xff]   ;;  %v911_v60 = vrot.slane %v3374_v20, %v910_v59  ;;  %p2771_p1 = scmp.ne.s32.totalorder %s3470_s25, %s2770_s17  ;;  %p3688_p4 = scmp.ne.s32.totalorder %s3669_s30, 0 }
  0xdf   : > { %v2459_v50 = vld [vmem:[#allocation11 + $0x10] sm:$0xff]   ;;  %v2461_v52 = vld [vmem:[#allocation11] sm:$0xff]   ;;  %v2466_v53 = vld [vmem:[#allocation13 + $0x38] sm:$0xff]   ;;  %s2960_s28 = smov [#allocation20]  }
  0xe0   : > { %2149 = vmatmul.mubr.msk.bf16.vlgmr.msra.gmra.mxu0 %vm732_vm1, %v2437_v4  ;;  %v2467_v54 = vld [vmem:[#allocation13 + $0x30] sm:$0xff]   ;;  %v2468_v55 = vld [vmem:[#allocation13 + $0x28] sm:$0xff]   ;;  %v2469_v56 = vld [vmem:[#allocation13 + $0x20] sm:$0xff]   ;;  %p2772_p8 = pnand %p2771_p1, %p3688_p4 }
  0xe1   : > { %2188 = vmatprep.mubr.msk.bf16.mxu0 %vm2959_vm0, %v2958_v0  ;;  %2157 = vmatpush3.bf16.msra.mxu1 %v2440_v6  ;;  %v2470_v57 = vld [vmem:[#allocation13 + $0x18] sm:$0xff]   ;;  %v2471_v58 = vld [vmem:[#allocation13 + $0x10] sm:$0xff]  }
  0xe2   : > { %2158 = vmatprep.subr.bf16.mxu1 %v2958_v0  ;;  %2173 = vmatpush3.bf16.msra.mxu0 %v2446_v12  ;;  %v2462_v3 = vld [vmem:[#allocation14 + $0x10] ss:$0 sps:$4 sm:$0xff]   ;;  %v2472_v12 = vld [vmem:[#allocation13 + $0x8] sm:$0xff]   ;;  %p2773_p11 = pneg %p2772_p8 }
  0xe3   : > { %2174 = vmatprep.subr.bf16.mxu0 %v2958_v0 }
  0xe5   : > { %2159 = vmatpush3.bf16.msra.mxu1 %v2441_v7 }
  0xe6   : > { %2160 = vmatprep.subr.bf16.mxu1 %v2958_v0  ;;  %2175 = vmatpush3.bf16.msra.mxu0 %v2447_v13  ;;  %v2473_v13 = vld [vmem:[#allocation13] sm:$0xff]  }
  0xe7   : > { %2176 = vmatprep.subr.bf16.mxu0 %v2958_v0 }
  0xe9   : > { %2161 = vmatpush3.bf16.msra.mxu1 %v2442_v8  ;;  %v1294_v8 = vsel %vm1292_vm2, %v2462_v3, 0 }
  0xea   : > { %2162 = vmatprep.subr.bf16.mxu1 %v2958_v0  ;;  %2177 = vmatpush3.bf16.msra.mxu0 %v2448_v14  ;;  %v1031_v14 = vsub.s32 3, %v3368_v18 }
  0xeb   : > { %2178 = vmatprep.subr.bf16.mxu0 %v2958_v0 }
  0xed   : > { %2163 = vmatpush3.bf16.msra.mxu1 %v2443_v9  ;;  %v2463_v9 = vld [vmem:[#allocation14 + $0x8] sm:$0xff]  }
  0xee   : > { %2164 = vmatprep.subr.bf16.mxu1 %v2958_v0  ;;  %2179 = vmatpush3.bf16.msra.mxu0 %v2449_v15  ;;  %v1032_v15 = vrot.slane %v3374_v20, %v1031_v14 }
  0xef   : > { %2180 = vmatprep.subr.bf16.mxu0 %v2958_v0 }
  0xf1   : > { %2165 = vmatpush3.bf16.msra.mxu1 %v2444_v10  ;;  %v2464_v10 = vld [vmem:[#allocation14] sm:$0xff]  }
  0xf2   : > { %2166 = vmatprep.subr.bf16.mxu1 %v2958_v0  ;;  %2181 = vmatpush3.bf16.msra.mxu0 %v2450_v16 }
  0xf3   : > { %2182 = vmatprep.subr.bf16.mxu0 %v2958_v0 }
  0xf5   : > { %2167 = vmatpush3.bf16.msra.mxu1 %v2445_v11  ;;  %v2465_v11 = vld [vmem:[%s598_s22] sm:$0xff]   ;;  %s3474_s22 = scalar_lea.sflag [#allocation21], %s594_s9 }
  0xf6   : > { %2192 = vmatprep.subr.bf16.mxu1 %v2958_v0  ;;  %2183 = vmatpush3.bf16.msra.mxu0 %v2451_v31 }
  0xf7   : > { %2184 = vmatprep.subr.bf16.mxu0 %v2958_v0 }
  0xfa   : > { %2185 = vmatpush3.bf16.msra.mxu0 %v2452_v32  ;;  %v2476_v32 = vld [vmem:[#allocation16 + $0x28] sm:$0xff]  }
  0xfb   : > { %2186 = vmatprep.subr.bf16.mxu0 %v2958_v0 }
  0xfe   : > { %2187 = vmatpush3.bf16.msra.mxu0 %v2453_v33 }
  0xff   : > { %2212 = vmatprep.subr.bf16.mxu0 %v2958_v0 }
 0x1a0   : > { %v770_v22 = vpop.f32.mrf.mxu0 }
 0x1a1   : > { %v771_v24 = vadd.f32 %v770_v22, %v714_v21 }
 0x1a2   : > { %v2150_v23 = vpop.f32.mrf.mxu0 }
 0x1a3   : > { %v777_v28 = vmax.f32 %v771_v24, 0.0 }
 0x1a4   : > { %v773_v25 = vpop.f32.mrf.mxu0 }
 0x1a5   : > { %v774_v26 = vadd.f32 %v773_v25, %v714_v21 }
 0x1a6   : > { %v2151_v27 = vpop.f32.mrf.mxu0 }
 0x1a7   : > { %v778_v29 = vmax.f32 %v774_v26, 0.0  ;;  %v2474_v27 = vld [vmem:[#allocation16 + $0x38] sm:$0xff]  }
 0x1a9   : > { %v779_v30 = vpack.c.bf16 %v778_v29, %v777_v28  ;;  %v2475_v29 = vld [vmem:[#allocation16 + $0x30] sm:$0xff]  }
 0x1ab   : > { %2169 = vmatmul.mubr.bf16.vlgmr.msra.gmra.mxu1 %v779_v30 }
 0x1ac   : > { %2208 = vmatprep.mubr.msk.bf16.mxu1 %vm2959_vm0, %v2958_v0  ;;  %2193 = vmatpush3.bf16.msra.mxu1 %v2454_v34 }
 0x1ad   : > { %2194 = vmatprep.subr.bf16.mxu1 %v2958_v0 }
 0x1b0   : > { %2195 = vmatpush3.bf16.msra.mxu1 %v2455_v35  ;;  %v2477_v35 = vld [vmem:[#allocation16 + $0x20] sm:$0xff]  }
 0x1b1   : > { %2196 = vmatprep.subr.bf16.mxu1 %v2958_v0 }
 0x1b4   : > { %2197 = vmatpush3.bf16.msra.mxu1 %v2456_v36  ;;  %v2478_v36 = vld [vmem:[#allocation16 + $0x18] sm:$0xff]  }
 0x1b5   : > { %2198 = vmatprep.subr.bf16.mxu1 %v2958_v0 }
 0x1b8   : > { %2199 = vmatpush3.bf16.msra.mxu1 %v2457_v37  ;;  %v3433_v37 = vld [vmem:[%s3627_s11] sm:$0x7] }
 0x1b9   : > { %2200 = vmatprep.subr.bf16.mxu1 %v2958_v0 }
 0x1bc   : > { %2201 = vmatpush3.bf16.msra.mxu1 %v2458_v38  ;;  %v2479_v38 = vld [vmem:[#allocation16 + $0x10] sm:$0xff]  }
 0x1bd   : > { %2202 = vmatprep.subr.bf16.mxu1 %v2958_v0 }
 0x1c0   : > { %2203 = vmatpush3.bf16.msra.mxu1 %v2459_v50  ;;  %v2485_v50 = vld [vmem:[#allocation17 + $0x20] sm:$0xff]  }
 0x1c1   : > { %2204 = vmatprep.subr.bf16.mxu1 %v2958_v0 }
 0x1c4   : > { %2205 = vmatpush3.bf16.msra.mxu1 %v2460_v51  ;;  %v2486_v51 = vld [vmem:[#allocation17 + $0x18] sm:$0xff]  }
 0x1c5   : > { %2206 = vmatprep.subr.bf16.mxu1 %v2958_v0 }
 0x1c8   : > { %2207 = vmatpush3.bf16.msra.mxu1 %v2461_v52  ;;  %v2487_v52 = vld [vmem:[#allocation17 + $0x10] sm:$0xff]  }
 0x1c9   : > { %2232 = vmatprep.subr.bf16.mxu1 %v2958_v0 }
 0x26b   : > { %v882_v41 = vpop.f32.mrf.mxu1 }
 0x26c   : > { %v883_v43 = vadd.f32 %v882_v41, %v799_v40  ;;  %v2480_v41 = vld [vmem:[#allocation16 + $0x8] sm:$0xff]  }
 0x26d   : > { %v2170_v42 = vpop.f32.mrf.mxu1 }
 0x26e   : > { %v889_v47 = vmax.f32 %v883_v43, 0.0 }
 0x26f   : > { %v885_v44 = vpop.f32.mrf.mxu1 }
 0x270   : > { %v886_v45 = vadd.f32 %v885_v44, %v799_v40  ;;  %v1267_v40 = vrot.slane %v3433_v37, %v713_v19  ;;  %v2481_v44 = vld [vmem:[#allocation16] sm:$0xff]   ;;  %v2483_v19 = vld [vmem:[#allocation17 + $0x30] sm:$0xff]  }
 0x271   : > { %v2171_v46 = vpop.f32.mrf.mxu1 }
 0x272   : > { %v890_v48 = vmax.f32 %v886_v45, 0.0 }
 0x274   : > { %v891_v49 = vpack.c.bf16 %v890_v48, %v889_v47  ;;  %v2482_v48 = vld [vmem:[#allocation17 + $0x38] sm:$0xff]  }
 0x276   : > { %2189 = vmatmul.mubr.bf16.vlgmr.msra.gmra.mxu0 %v891_v49  ;;  %v2484_v49 = vld [vmem:[#allocation17 + $0x28] sm:$0xff]  }
 0x277   : > { %2228 = vmatprep.mubr.msk.bf16.mxu0 %vm2959_vm0, %v2958_v0  ;;  %2213 = vmatpush3.bf16.msra.mxu0 %v2466_v53  ;;  %v2488_v53 = vld [vmem:[#allocation17 + $0x8] sm:$0xff]  }
 0x278   : > { %2214 = vmatprep.subr.bf16.mxu0 %v2958_v0 }
 0x27b   : > { %2215 = vmatpush3.bf16.msra.mxu0 %v2467_v54  ;;  %v2489_v54 = vld [vmem:[#allocation17] sm:$0xff]  }
 0x27c   : > { %2216 = vmatprep.subr.bf16.mxu0 %v2958_v0 }
 0x27f   : > { %2217 = vmatpush3.bf16.msra.mxu0 %v2468_v55  ;;  %v1143_v55 = vsub.s32 4, %v3368_v18 }
 0x280   : > { %2218 = vmatprep.subr.bf16.mxu0 %v2958_v0 }
 0x283   : > { %2219 = vmatpush3.bf16.msra.mxu0 %v2469_v56  ;;  %v1144_v56 = vrot.slane %v3374_v20, %v1143_v55  ;;  %v1359_v20 = vrot.slane %v3433_v37, %v798_v39 }
 0x284   : > { %2220 = vmatprep.subr.bf16.mxu0 %v2958_v0 }
 0x287   : > { %2221 = vmatpush3.bf16.msra.mxu0 %v2470_v57 }
 0x288   : > { %2222 = vmatprep.subr.bf16.mxu0 %v2958_v0 }
 0x28b   : > { %2223 = vmatpush3.bf16.msra.mxu0 %v2471_v58 }
 0x28c   : > { %2224 = vmatprep.subr.bf16.mxu0 %v2958_v0 }
 0x28f   : > { %2225 = vmatpush3.bf16.msra.mxu0 %v2472_v12 }
 0x290   : > { %2226 = vmatprep.subr.bf16.mxu0 %v2958_v0 }
 0x293   : > { %2227 = vmatpush3.bf16.msra.mxu0 %v2473_v13 }
 0x294   : > { %2242 = vmatprep.subr.bf16.mxu0 %v2958_v0 }
 0x336   : > { %v994_v61 = vpop.f32.mrf.mxu0 }
 0x337   : > { %v995_v63 = vadd.f32 %v994_v61, %v911_v60 }
 0x338   : > { %v2190_v62 = vpop.f32.mrf.mxu0 }
 0x339   : > { %v1001_v5 = vmax.f32 %v995_v63, 0.0 }
 0x33a   : > { %v997_v1 = vpop.f32.mrf.mxu0 }
 0x33b   : > { %v998_v2 = vadd.f32 %v997_v1, %v911_v60 }
 0x33c   : > { %v2191_v4 = vpop.f32.mrf.mxu0 }
 0x33d   : > { %v1002_v6 = vmax.f32 %v998_v2, 0.0 }
 0x33f   : > { %v1003_v7 = vpack.c.bf16 %v1002_v6, %v1001_v5 }
 0x341   : > { %2067 = vst [vmem:[%s675_s15] sm:$0xff] %v1003_v7   ;;  %2209 = vmatmul.mubr.bf16.vlgmr.msra.gmra.mxu1 %v1003_v7  ;;  %s2774_s15 = sshll.u32 %s2960_s28, 4  ;;  %s2775_s15 = int_to_ptr.vmem [resolvable:$false] %s2774_s15 }
 0x342   : > { %2233 = vmatpush3.bf16.msra.mxu1 %v1294_v8  ;;  %2238 = vmatprep.mubr.msk.bf16.mxu1 %vm2959_vm0, %v2958_v0  ;;  %s2776_s8 = scalar_lea.vmem %s2775_s15, 256  ;;  %p2777_p3 = scmp.lt.s32.totalorder %s3470_s25, %s2775_s15 }
 0x343   : > { %2234 = vmatprep.subr.bf16.mxu1 %v2958_v0  ;;  %p2778_p7 = scmp.lt.s32.totalorder %s2776_s8, %s2770_s17 }
 0x345   : > { %p2779_p6 = por %p2778_p7, %p2777_p3 }
 0x346   : > { %2235 = vmatpush3.bf16.msra.mxu1 %v2463_v9 }
 0x347   : > { %2236 = vmatprep.subr.bf16.mxu1 %v2958_v0  ;;  %p2780_p10 = pnand %p2779_p6, %p2773_p11 }
 0x34a   : > { %2237 = vmatpush3.bf16.msra.mxu1 %v2464_v10 }
 0x34b   : > { %2262 = vmatprep.subr.bf16.mxu1 %v2958_v0 }
 0x34d   : > { %2239 = vmatmul.mubr.msk.bf16.vlgmr.msra.gmra.mxu1 %vm1288_vm3, %v2465_v11 }
 0x34e   : > { %2278 = vmatprep.mubr.msk.bf16.mxu1 %vm2959_vm0, %v2958_v0  ;;  %2263 = vmatpush3.bf16.msra.mxu1 %v2482_v48 }
 0x34f   : > { %2264 = vmatprep.subr.bf16.mxu1 %v2958_v0 }
 0x352   : > { %2265 = vmatpush3.bf16.msra.mxu1 %v2483_v19 }
 0x353   : > { %2266 = vmatprep.subr.bf16.mxu1 %v2958_v0 }
 0x356   : > { %2267 = vmatpush3.bf16.msra.mxu1 %v2484_v49 }
 0x357   : > { %2268 = vmatprep.subr.bf16.mxu1 %v2958_v0 }
 0x35a   : > { %2269 = vmatpush3.bf16.msra.mxu1 %v2485_v50 }
 0x35b   : > { %2270 = vmatprep.subr.bf16.mxu1 %v2958_v0 }
 0x35e   : > { %2271 = vmatpush3.bf16.msra.mxu1 %v2486_v51 }
 0x35f   : > { %2272 = vmatprep.subr.bf16.mxu1 %v2958_v0 }
 0x362   : > { %2273 = vmatpush3.bf16.msra.mxu1 %v2487_v52 }
 0x363   : > { %2274 = vmatprep.subr.bf16.mxu1 %v2958_v0 }
 0x366   : > { %2275 = vmatpush3.bf16.msra.mxu1 %v2488_v53 }
 0x367   : > { %2276 = vmatprep.subr.bf16.mxu1 %v2958_v0 }
 0x36a   : > { %2277 = vmatpush3.bf16.msra.mxu1 %v2489_v54 }
 0x401   : > { %v1115_v16 = vpop.f32.mrf.mxu1 }
 0x402   : > { %v1116_v21 = vadd.f32 %v1115_v16, %v1032_v15 }
 0x403   : > { %v2210_v17 = vpop.f32.mrf.mxu1 }
 0x404   : > { %v1122_v25 = vmax.f32 %v1116_v21, 0.0 }
 0x405   : > { %v1118_v22 = vpop.f32.mrf.mxu1 }
 0x406   : > { %v1119_v23 = vadd.f32 %v1118_v22, %v1032_v15 }
 0x407   : > { %v2211_v24 = vpop.f32.mrf.mxu1 }
 0x408   : > { %v1123_v26 = vmax.f32 %v1119_v23, 0.0 }
 0x40a   : > { %v1124_v28 = vpack.c.bf16 %v1123_v26, %v1122_v25 }
 0x40c   : > { %2229 = vmatmul.mubr.bf16.vlgmr.msra.gmra.mxu0 %v1124_v28 }
 0x40d   : > { %2243 = vmatpush3.bf16.msra.mxu0 %v2474_v27  ;;  %v1330_v30 = vpop.f32.mrf.mxu1  ;;  %2258 = vmatprep.mubr.msk.bf16.mxu0 %vm2959_vm0, %v2958_v0 }
 0x40e   : > { %2244 = vmatprep.subr.bf16.mxu0 %v2958_v0  ;;  %v1331_v42 = vadd.f32 %v1330_v30, %v1267_v40 }
 0x40f   : > { %v2240_v31 = vpop.f32.mrf.mxu1 }
 0x410   : > { %v1337_v45 = vmax.f32 %v1331_v42, 0.0 }
 0x411   : > { %2245 = vmatpush3.bf16.msra.mxu0 %v2475_v29  ;;  %v1333_v33 = vpop.f32.mrf.mxu1 }
 0x412   : > { %2246 = vmatprep.subr.bf16.mxu0 %v2958_v0  ;;  %v1334_v43 = vadd.f32 %v1333_v33, %v1267_v40 }
 0x413   : > { %v2241_v34 = vpop.f32.mrf.mxu1 }
 0x414   : > { %v1338_v46 = vmax.f32 %v1334_v43, 0.0 }
 0x415   : > { %2247 = vmatpush3.bf16.msra.mxu0 %v2476_v32 }
 0x416   : > { %2248 = vmatprep.subr.bf16.mxu0 %v2958_v0  ;;  %v1339_v47 = vpack.c.bf16 %v1338_v46, %v1337_v45 }
 0x419   : > { %2249 = vmatpush3.bf16.msra.mxu0 %v2477_v35 }
 0x41a   : > { %2250 = vmatprep.subr.bf16.mxu0 %v2958_v0 }
 0x41d   : > { %2251 = vmatpush3.bf16.msra.mxu0 %v2478_v36 }
 0x41e   : > { %2252 = vmatprep.subr.bf16.mxu0 %v2958_v0 }
 0x421   : > { %2253 = vmatpush3.bf16.msra.mxu0 %v2479_v38 }
 0x422   : > { %2254 = vmatprep.subr.bf16.mxu0 %v2958_v0 }
 0x425   : > { %2255 = vmatpush3.bf16.msra.mxu0 %v2480_v41 }
 0x426   : > { %2256 = vmatprep.subr.bf16.mxu0 %v2958_v0 }
 0x429   : > { %2257 = vmatpush3.bf16.msra.mxu0 %v2481_v44 }
 0x42c   : > { %2259 = vmatmul.mubr.bf16.vlgmr.msra.gmra.mxu0 %v1339_v47 }
 0x4cc   : > { %v1227_v57 = vpop.f32.mrf.mxu0 }
 0x4cd   : > { %v1228_v58 = vadd.f32 %v1227_v57, %v1144_v56 }
 0x4ce   : > { %v2230_v60 = vpop.f32.mrf.mxu0 }
 0x4cf   : > { %v2004_v61 = vmul.f32 -1.442695, %v1228_v58 }
 0x4d0   : > { %v1230_v62 = vpop.f32.mrf.mxu0 }
 0x4d1   : > { %2490 = vpow2.f32 %v2004_v61  ;;  %v1231_v63 = vadd.f32 %v1230_v62, %v1144_v56 }
 0x4d2   : > { %v2231_v1 = vpop.f32.mrf.mxu0 }
 0x4d3   : > { %v2005_v2 = vmul.f32 -1.442695, %v1231_v63 }
 0x4d5   : > { %2492 = vpow2.f32 %v2005_v2 }
 0x4de   : > { %v2491_v3 = vpop.eup %2490 }
 0x4df   : > { %v1240_v4 = vadd.f32 1.0, %v2491_v3 }
 0x4e1   : > { %2494 = vrcp.f32 %v1240_v4 }
 0x4e2   : > { %v2493_v5 = vpop.eup %2492 }
 0x4e3   : > { %v1241_v0 = vadd.f32 1.0, %v2493_v5 }
 0x4e5   : > { %2496 = vrcp.f32 %v1241_v0 }
 0x4ec   : > { %v1442_v6 = vpop.f32.mrf.mxu0 }
 0x4ed   : > { %v1443_v8 = vadd.f32 %v1442_v6, %v1359_v20 }
 0x4ee   : > { %v2260_v7 = vpop.f32.mrf.mxu0  ;;  %v2495_v10 = vpop.eup %2494 }
 0x4ef   : > { %v1449_v14 = vmax.f32 %v1443_v8, 0.0 }
 0x4f0   : > { %v1445_v9 = vpop.f32.mrf.mxu0 }
 0x4f1   : > { %v1446_v11 = vadd.f32 %v1445_v9, %v1359_v20 }
 0x4f2   : > { %v2497_v12 = vpop.eup %2496  ;;  %v2261_v13 = vpop.f32.mrf.mxu0 }
 0x4f3   : > { %v1450_v15 = vmax.f32 %v1446_v11, 0.0  ;;  %v2071_v16 = vpack.c.bf16 %v2497_v12, %v2495_v10 }
 0x4f5   : > { %v1451_v17 = vpack.c.bf16 %v1450_v15, %v1449_v14  ;;  %2072 = vst [vmem:[%s682_s14] sm:$0xff] %v2071_v16  }
 0x4f7   : > { %2077 = vst [vmem:[%s689_s27] sm:$0xff] %v1451_v17   ;;  %2279 = vmatmul.mubr.bf16.vlgmr.msra.gmra.mxu1 %v1451_v17 }
 0x4f8   : > { %2783 = shalt.err (!%p2780_p10)
}
 0x4f9   : > { %s2784_s24 = scalar_lea.hbm %s3468_s5, 128  ;;  %s2788_s14 = scalar_lea.hbm %s3629_s13, 256 }
 0x4fa   : > { %p2785_p0 = scmp.ne.s32.totalorder %s3468_s5, %s2784_s24  ;;  %p2789_p9 = scmp.lt.s32.totalorder %s3468_s5, %s3629_s13 }
 0x4fb   : > { %p2790_p12 = scmp.lt.s32.totalorder %s2788_s14, %s2784_s24 }
 0x4fc   : > { %p2786_p2 = pnand %p2785_p0, %p3688_p4 }
 0x4fd   : > { %p2791_p13 = por %p2790_p12, %p2789_p9 }
 0x4fe   : > { %p2787_p5 = pneg %p2786_p2 }
 0x500   : > { %p2792_p1 = pnand %p2791_p13, %p2787_p5 }
 0x502   : > { %2795 = shalt.err (!%p2792_p1)
}
 0x503   : > { %s2961_s23 = smov 64   ;;  %s2962_s17 = smov 4  }
 0x504   : > { %2319 = dma.vmem_to_hbm [thread:$0]  (%p3688_p4), %s3470_s25, 128, %s3468_s5, %s3474_s22, %s2961_s23, %s2961_s23, %s2962_s17  }
 0x505   : > { %s3504_s8 = scalar_lea.hbm %s3628_s12, %s3462_s26  ;;  %s3689_s3 = sld [smem:[#allocation47_spill]] }
 0x506   : > { %s1593_s27 = scalar_lea.sflag [#allocation4], %s3306_s0  ;;  %s2796_s6 = scalar_lea.vmem %s3457_s4, 128 }
 0x507   : > { %p2797_p8 = scmp.ne.s32.totalorder %s3457_s4, %s2796_s6  ;;  %s2963_s1 = smov [#allocation19]  }
 0x508   : > { %s2800_s7 = sshll.u32 %s2963_s1, 4  ;;  %s2801_s7 = int_to_ptr.vmem [resolvable:$false] %s2800_s7 }
 0x509   : > { %p2798_p11 = pnand %p2797_p8, %p3688_p4  ;;  %s2802_s5 = scalar_lea.vmem %s2801_s7, 256 }
 0x50a   : > { %p2803_p7 = scmp.lt.s32.totalorder %s3457_s4, %s2801_s7  ;;  %p2804_p6 = scmp.lt.s32.totalorder %s2802_s5, %s2796_s6 }
 0x50b   : > { %s3510_s14 = scalar_lea.hbm %s3689_s3, %s3462_s26  ;;  %p2799_p3 = pneg %p2798_p11 }
 0x50c   : > { %p2805_p10 = por %p2804_p6, %p2803_p7 }
 0x50e   : > { %p2806_p0 = pnand %p2805_p10, %p2799_p3 }
 0x510   : > { %2809 = shalt.err (!%p2806_p0)
}
 0x511   : > { %s2810_s25 = scalar_lea.hbm %s3504_s8, 128  ;;  %s2814_s1 = scalar_lea.hbm %s3628_s12, 256 }
 0x512   : > { %p2811_p2 = scmp.ne.s32.totalorder %s3504_s8, %s2810_s25  ;;  %p2815_p12 = scmp.lt.s32.totalorder %s3504_s8, %s3628_s12 }
 0x513   : > { %p2816_p13 = scmp.lt.s32.totalorder %s2814_s1, %s2810_s25 }
 0x514   : > { %p2812_p5 = pnand %p2811_p2, %p3688_p4 }
 0x515   : > { %p2817_p1 = por %p2816_p13, %p2815_p12 }
 0x516   : > { %p2813_p9 = pneg %p2812_p5 }
 0x518   : > { %p2818_p8 = pnand %p2817_p1, %p2813_p9 }
 0x51a   : > { %2821 = shalt.err (!%p2818_p8)
}
 0x51b   : > { %2318 = dma.vmem_to_hbm [thread:$0]  (%p3688_p4), %s3457_s4, 128, %s3504_s8, %s1593_s27, %s2961_s23, %s2961_s23, %s2962_s17  }
 0x51c   : > { %s2822_s7 = scalar_lea.vmem %s3459_s10, 128  ;;  %s2964_s6 = smov [#allocation22]  }
 0x51d   : > { %p2823_p11 = scmp.ne.s32.totalorder %s3459_s10, %s2822_s7  ;;  %s2826_s5 = sshll.u32 %s2964_s6, 4  ;;  %s2827_s5 = int_to_ptr.vmem [resolvable:$false] %s2826_s5 }
 0x51e   : > { %s2828_s25 = scalar_lea.vmem %s2827_s5, 256  ;;  %p2829_p6 = scmp.lt.s32.totalorder %s3459_s10, %s2827_s5 }
 0x51f   : > { %p2824_p3 = pnand %p2823_p11, %p3688_p4  ;;  %p2830_p10 = scmp.lt.s32.totalorder %s2828_s25, %s2822_s7 }
 0x521   : > { %p2825_p7 = pneg %p2824_p3  ;;  %p2831_p0 = por %p2830_p10, %p2829_p6 }
 0x523   : > { %p2832_p2 = pnand %p2831_p0, %p2825_p7 }
 0x525   : > { %2835 = shalt.err (!%p2832_p2)
}
 0x526   : > { %s2836_s28 = scalar_lea.hbm %s3510_s14, 128  ;;  %s2840_s27 = scalar_lea.hbm %s3689_s3, 256 }
 0x527   : > { %p2837_p5 = scmp.ne.s32.totalorder %s3510_s14, %s2836_s28  ;;  %p2841_p13 = scmp.lt.s32.totalorder %s3510_s14, %s3689_s3 }
 0x528   : > { %p2842_p1 = scmp.lt.s32.totalorder %s2840_s27, %s2836_s28 }
 0x529   : > { %p2838_p9 = pnand %p2837_p5, %p3688_p4 }
 0x52a   : > { %p2843_p8 = por %p2842_p1, %p2841_p13 }
 0x52b   : > { %p2839_p12 = pneg %p2838_p9 }
 0x52d   : > { %p2844_p11 = pnand %p2843_p8, %p2839_p12 }
 0x52f   : > { %2847 = shalt.err (!%p2844_p11)
}
 0x530   : > { %2320 = dma.vmem_to_hbm [thread:$0]  (%p3688_p4), %s3459_s10, 128, %s3510_s14, %s3474_s22, %s2961_s23, %s2961_s23, %s2962_s17   ;;  %v1480_v39 = vrot.slane %v3433_v37, %v910_v59 }
 0x531   : > { %s696_s10 = scalar_lea.vmem [#allocation23], %s3309_s29  ;;  %s3690_s9 = sld [smem:[#allocation48_spill]] }
 0x532   : > { %s1669_s22 = sshll.u32 %s696_s10, 4  ;;  %s1608_s6 = scalar_lea.sflag [#allocation24], %s3306_s0  ;;  %s3570_s22 = int_to_ptr.vmem [resolvable:$true] %s1669_s22 }
 0x533   : > { %s2848_s5 = scalar_lea.vmem %s3570_s22, 128  ;;  %s2965_s29 = smov [#allocation23]  }
 0x534   : > { %p2849_p3 = scmp.ne.s32.totalorder %s3570_s22, %s2848_s5  ;;  %s2852_s25 = sshll.u32 %s2965_s29, 4  ;;  %s2853_s25 = int_to_ptr.vmem [resolvable:$false] %s2852_s25 }
 0x535   : > { %s2854_s28 = scalar_lea.vmem %s2853_s25, 256  ;;  %p2855_p10 = scmp.lt.s32.totalorder %s3570_s22, %s2853_s25 }
 0x536   : > { %p2850_p7 = pnand %p2849_p3, %p3688_p4  ;;  %p2856_p0 = scmp.lt.s32.totalorder %s2854_s28, %s2848_s5 }
 0x537   : > { %s3568_s7 = scalar_lea.hbm %s3690_s9, %s3462_s26 }
 0x538   : > { %p2851_p6 = pneg %p2850_p7  ;;  %p2857_p2 = por %p2856_p0, %p2855_p10 }
 0x53a   : > { %p2858_p5 = pnand %p2857_p2, %p2851_p6 }
 0x5b7   : > { %v1563_v21 = vpop.f32.mrf.mxu1 }
 0x5b8   : > { %v1564_v22 = vadd.f32 %v1563_v21, %v1480_v39 }
 0x5b9   : > { %v2280_v23 = vpop.f32.mrf.mxu1 }
 0x5ba   : > { %v2031_v24 = vmul.f32 -1.442695, %v1564_v22 }
 0x5bb   : > { %v1566_v25 = vpop.f32.mrf.mxu1 }
 0x5bc   : > { %2498 = vpow2.f32 %v2031_v24  ;;  %v1567_v26 = vadd.f32 %v1566_v25, %v1480_v39 }
 0x5bd   : > { %v2281_v27 = vpop.f32.mrf.mxu1 }
 0x5be   : > { %v2032_v28 = vmul.f32 -1.442695, %v1567_v26 }
 0x5c0   : > { %2500 = vpow2.f32 %v2032_v28 }
 0x5c9   : > { %v2499_v29 = vpop.eup %2498 }
 0x5ca   : > { %v1576_v30 = vadd.f32 1.0, %v2499_v29 }
 0x5cc   : > { %2502 = vrcp.f32 %v1576_v30 }
 0x5cd   : > { %v2501_v31 = vpop.eup %2500 }
 0x5ce   : > { %v1577_v18 = vadd.f32 1.0, %v2501_v31 }
 0x5d0   : > { %2504 = vrcp.f32 %v1577_v18 }
 0x5d9   : > { %v2503_v59 = vpop.eup %2502 }
 0x5dd   : > { %v2505_v32 = vpop.eup %2504 }
 0x5de   : > { %v2081_v33 = vpack.c.bf16 %v2505_v32, %v2503_v59 }
 0x5e0   : > { %2082 = vst [vmem:[%s696_s10] sm:$0xff] %v2081_v33  }
 0x5e1   : > { %2861 = shalt.err (!%p2858_p5)
}
 0x5e2   : > { %s2862_s26 = scalar_lea.hbm %s3568_s7, 128  ;;  %s2866_s8 = scalar_lea.hbm %s3690_s9, 256 }
 0x5e3   : > { %p2863_p9 = scmp.ne.s32.totalorder %s3568_s7, %s2862_s26  ;;  %p2867_p1 = scmp.lt.s32.totalorder %s3568_s7, %s3690_s9 }
 0x5e4   : > { %p2868_p8 = scmp.lt.s32.totalorder %s2866_s8, %s2862_s26 }
 0x5e5   : > { %p2864_p12 = pnand %p2863_p9, %p3688_p4 }
 0x5e6   : > { %p2869_p11 = por %p2868_p8, %p2867_p1 }
 0x5e7   : > { %p2865_p13 = pneg %p2864_p12 }
 0x5e9   : > { %p2870_p3 = pnand %p2869_p11, %p2865_p13 }
 0x5eb   : > { %2873 = shalt.err (!%p2870_p3)
}
 0x5ec   : > { %2321 = dma.vmem_to_hbm [thread:$0]  (%p3688_p4), %s3570_s22, 128, %s3568_s7, %s1608_s6, %s2961_s23, %s2961_s23, %s2962_s17  }
 0x5ed PF: > { %s1684_s1 = sand.u32 1, %s2932_s18   ;;  %p3691_p7 = scmp.ne.s32.totalorder %s3670_s2, 0 }
 0x5ee   : > { %p3692_p6 = scmp.ge.s32.totalorder %s2944_s21, 2  ;;  %s1685_s10 = scalar_lea.sflag [#allocation4], %s1684_s1 }
 0x5f0   : > { %p2359_p10 = pnand %p3692_p6, %p3691_p7 }
 0x5f2   : > { %p2360_p0 = pneg %p2359_p10 }
 0x5f4   : > { %2919 = dma.done.wait (%p2360_p0), %s1685_s10, 128  }
 0x5f5   : > { %2921 = vsyncadd (%p2360_p0), %s1685_s10, 4294967168  ;;  %s3693_s30 = sadd.s32 4294967294, %s2944_s21  }
 0x5f6   : > { %s1693_s14 = sand.u32 1, %s3693_s30  }
 0x5f7   : > { %s1694_s24 = scalar_lea.sflag [#allocation21], %s1693_s14 }
 0x5f8   : > { %2923 = dma.done.wait (%p2360_p0), %s1694_s24, 256  }
 0x5f9   : > { %2925 = vsyncadd (%p2360_p0), %s1694_s24, 4294967040  ;;  %s1712_s5 = scalar_lea.sflag [#allocation24], %s1684_s1 }
 0x5fa   : > { %2927 = dma.done.wait (%p2360_p0), %s1712_s5, 128  }
 0x5fb   : > { %2929 = vsyncadd (%p2360_p0), %s1712_s5, 4294967168  ;;  %s3694_s23 = sld [smem:[#allocation35_spill]]  ;;  %p42_p4 = scmp.ge.s32.totalorder %s3187_s16, 4  }
 0x5fc   : > { %s3695_s18 = smov %s2936_s19  ;;  %s3696_s19 = smov %s2940_s20 }
 0x5fd   : > { %s3698_s21 = smov %s3187_s16  ;;  %44 = sbr.rel (!%p42_p4) target bundleno = 29 (0x1d), region = 207 }
 0x601   : > { %s3697_s20 = smov %s3694_s23 }
 0x602   :  { %1717 = vsyncpa [#allocation3], 1 }
 0x603   :  { %1719 = vsyncpa [#allocation3 + $0x1], 1 }
 0x604   :  { %1720 = vsyncpa [#allocation6], 1 }
 0x605   :  { %1722 = vsyncpa [#allocation6 + $0x1], 1 }
 0x606   :  { %1723 = vsyncpa [#allocation9], 1 }
 0x607   :  { %1724 = vsyncpa [#allocation12], 1 }
 0x608   :  { %1725 = vsyncpa [#allocation15], 1 }
 0x609   :  { %1726 = vsyncpa [#allocation18], 1 }
 0x60a   :  { %1727 = vsyncpa [#allocation4], 1 }
 0x60b   :  { %1729 = vsyncpa [#allocation4 + $0x1], 1 }
 0x60c   :  { %1730 = vsyncpa [#allocation21], 1 }
 0x60d   :  { %1732 = vsyncpa [#allocation21 + $0x1], 1 }
 0x60e   :  { %1733 = vsyncpa [#allocation24], 1 }
 0x60f   :  { %1735 = vsyncpa [#allocation24 + $0x1], 1 }

</bundles_post_ra>
